<compile_context>
chip_gen: v6e
topology: v6e:2x2x1
jax: 0.10.0
libtpu: 0.0.40
codegen_flags: <defaults>
</compile_context>

<pallas_src>
import functools

import numpy as np
import jax
import jax.numpy as jnp
from jax import lax
from jax.experimental import pallas as pl
from jax.experimental.pallas import tpu as pltpu


def _encode_block_kernel(x_ref, w_ref, scale_ref, shift_ref, mask_ref, *rest,
                         W, act_type, use_pool):
    """One batch block (Nb samples) per grid step; all operands VMEM-resident.

    x_ref:     (Nb, Cin, H*W)     f32/bf16  input, spatial flattened on lanes
    w_ref:     (Cout, 9*Cin)      bf16      conv weights, tap-major (kh, kw, ci)
    scale_ref: (Cout, 1)          f32       folded BN scale (1.0 when no BN)
    shift_ref: (Cout, 1)          f32       folded conv-bias + BN shift
    mask_ref:  (9, H*W)           bf16      0/1 boundary masks (implicit zero pad)
    [pool_ref: (H*W, Ho*Wo)       bf16      constant 0/0.25 AvgPool2d(2) matrix]
    o_ref:     (Nb, Cout, cols)   f32       cols = Ho*Wo (pooled) or H*W
    patch_ref: (Nb, 9*Cin, H*W)   f32       VMEM scratch: im2col patch matrix
    """
    if use_pool:
        pool_ref, o_ref, patch_ref = rest
    else:
        o_ref, patch_ref = rest

    Nb, Cin, HW = x_ref.shape

    x = x_ref[...].astype(jnp.float32)              # (Nb, Cin, HW)
    masks = mask_ref[...].astype(jnp.float32)       # (9, HW) — 0/1, exact
    w = w_ref[...]                                   # (Cout, 9*Cin) bf16
    scale = scale_ref[...]                           # (Cout, 1) f32
    shift = shift_ref[...]                           # (Cout, 1) f32
    pool = pool_ref[...] if use_pool else None       # (HW, cols) bf16

    # ---- im2col patch build: 9 lane-rolls (XLU) + boundary masks (VPU), each
    #      masked tap stored at its static row block of the VMEM scratch (vst slot).
    #      Roll wrap-around positions are always zero-padding positions -> masked.
    for t in range(9):
        kh, kw = divmod(t, 3)
        s = (kh - 1) * W + (kw - 1)                  # flat source offset of this tap
        shifted = x if s == 0 else pltpu.roll(x, (-s) % HW, 2)
        patch_ref[:, t * Cin:(t + 1) * Cin, :] = shifted * masks[t].reshape(1, 1, HW)

    # ---- per sub-batch: single MXU matmul (K = 9*Cin), f32 epilogue, fused pool ----
    for b in range(Nb):
        patches = patch_ref[b].astype(jnp.bfloat16)               # (9*Cin, HW)
        y = jnp.dot(w, patches, preferred_element_type=jnp.float32)  # (Cout, HW) f32
        y = y * scale + shift                        # BN scale + (bias,BN) shift, f32
        if act_type == 'LReLU':
            y = jnp.where(y >= 0, y, 0.2 * y)
        elif act_type == 'Tanh':
            y = jnp.tanh(y)                          # EUP
        if use_pool:                                 # fused AvgPool2d(2), bf16 MXU
            y = jnp.dot(y.astype(jnp.bfloat16), pool,
                        preferred_element_type=jnp.float32)
        o_ref[b] = y.astype(o_ref.dtype)


def encode_block_forward(x_nchw, w, b, bn_params=None, *, use_bn=True,
                         act_type='LReLU', use_pool=True):
    """Forward pass of EncodeBlock. x_nchw: (N, Cin, H, W) float32 -> NCHW out."""
    assert act_type in ('LReLU', 'Tanh', 'none', None), \
        f"unsupported act_type: {act_type!r}"
    N, Cin, H, W = x_nchw.shape
    Cout = w.shape[0]
    HW = H * W
    if use_pool:
        assert H % 2 == 0 and W % 2 == 0, "fused AvgPool2d(2) assumes even H, W"
        Ho, Wo = H // 2, W // 2
        out_cols = Ho * Wo
    else:
        out_cols = HW

    # ----- parameter folding (tiny, plain JAX) -----
    if use_bn:
        gamma, beta, running_mean, running_var, eps = bn_params
        scale = gamma / jnp.sqrt(running_var + eps)
        shift = (b - running_mean) * scale + beta
    else:
        scale = jnp.ones((Cout,), jnp.float32)
        shift = b.astype(jnp.float32)
    # Weights stay un-scaled bf16 (tap-major layout (kh, kw, ci)); BN scale is applied
    # post-matmul in f32 so bf16 quantization is not amplified by 1/sqrt(var).
    w_flat = jnp.transpose(w.astype(jnp.float32), (0, 2, 3, 1)).reshape(Cout, 9 * Cin)
    w_flat = w_flat.astype(jnp.bfloat16)
    scale2 = scale.reshape(Cout, 1).astype(jnp.float32)
    shift2 = shift.reshape(Cout, 1).astype(jnp.float32)

    # Constant 0/1 boundary masks (zero padding expressed as masked taps) — bf16 exact.
    hh = np.arange(H).reshape(H, 1)
    ww = np.arange(W).reshape(1, W)
    masks_np = np.zeros((9, HW), np.float32)
    for kh in range(3):
        for kw in range(3):
            dh, dw = kh - 1, kw - 1
            valid = ((hh + dh >= 0) & (hh + dh < H) &
                     (ww + dw >= 0) & (ww + dw < W))
            masks_np[kh * 3 + kw] = valid.reshape(HW).astype(np.float32)
    masks = jnp.asarray(masks_np, dtype=jnp.bfloat16)

    # ----- batch blocking: Nb samples per grid step, >= 2 steps for the 2 v7x TCs -----
    num_steps = 2 if N > 1 else 1
    Nb = -(-N // num_steps)
    per_sample_bytes = 2 * Cin * HW * 4 + 2 * Cout * out_cols * 4 + 9 * Cin * HW * 4
    Nb = max(1, min(Nb, (8 << 20) // per_sample_bytes))      # keep the step under VMEM
    num_steps = -(-N // Nb)
    N_pad = num_steps * Nb

    # Free reshape: NCHW is contiguous, spatial goes onto the lane axis.
    x_flat = x_nchw.astype(jnp.float32).reshape(N, Cin, HW)
    if N_pad != N:
        x_flat = jnp.concatenate(
            [x_flat, jnp.zeros((N_pad - N, Cin, HW), x_flat.dtype)], axis=0)

    in_arrays = [x_flat, w_flat, scale2, shift2, masks]
    if use_pool:
        pool_np = np.zeros((HW, out_cols), np.float32)
        for ho in range(Ho):
            for wo in range(Wo):
                q = ho * Wo + wo
                for a in range(2):
                    for c in range(2):
                        pool_np[(2 * ho + a) * W + (2 * wo + c), q] = 0.25
        in_arrays.append(jnp.asarray(pool_np, dtype=jnp.bfloat16))   # 0/0.25 exact

    kernel = functools.partial(_encode_block_kernel, W=W,
                               act_type=act_type, use_pool=use_pool)

    conv_flops = 2 * N_pad * Cout * 9 * Cin * HW
    pool_flops = 2 * N_pad * Cout * HW * out_cols if use_pool else 0
    const_bytes = (Cout * 9 * Cin * 2 + 2 * Cout * 4 + 9 * HW * 2 +
                   (HW * out_cols * 2 if use_pool else 0))
    cost = pl.CostEstimate(
        flops=int(conv_flops + pool_flops),
        transcendentals=int(N_pad * Cout * HW) if act_type == 'Tanh' else 0,
        bytes_accessed=int(N_pad * Cin * HW * 4 + N_pad * Cout * out_cols * 4
                           + const_bytes))

    def build_in_specs(single_buffer_consts):
        # Grid-invariant operands: ask Mosaic not to double-buffer them (VMEM headroom
        # on v7x). Falls back to a plain BlockSpec on jax builds without pipeline_mode.
        def const_spec(shape):
            if single_buffer_consts:
                try:
                    return pl.BlockSpec(shape, lambda n: (0,) * len(shape),
                                        pipeline_mode=pl.Buffered(1))
                except (TypeError, AttributeError):
                    pass
            return pl.BlockSpec(shape, lambda n: (0,) * len(shape))
        specs = [pl.BlockSpec((Nb, Cin, HW), lambda n: (n, 0, 0)),
                 const_spec((Cout, 9 * Cin)),
                 const_spec((Cout, 1)),
                 const_spec((Cout, 1)),
                 const_spec((9, HW))]
        if use_pool:
            specs.append(const_spec((HW, out_cols)))
        return specs

    def run(single_buffer_consts):
        out = pl.pallas_call(
            kernel,
            out_shape=jax.ShapeDtypeStruct((N_pad, Cout, out_cols), jnp.float32),
            grid=(num_steps,),
            in_specs=build_in_specs(single_buffer_consts),
            out_specs=pl.BlockSpec((Nb, Cout, out_cols), lambda n: (n, 0, 0)),
            scratch_shapes=[pltpu.VMEM((Nb, 9 * Cin, HW), jnp.float32)],
            compiler_params=pltpu.CompilerParams(
                dimension_semantics=("parallel",)),   # batch blocks on both v7x TCs
            cost_estimate=cost,
        )(*in_arrays)
        return jax.block_until_ready(out)

    try:
        out_flat = run(True)
    except Exception:
        # pl.Buffered(1) not supported by this jax/Mosaic build — rerun without it.
        out_flat = run(False)

    if N_pad != N:
        out_flat = out_flat[:N]
    # Output is already channel-major: a free reshape gives NCHW.
    if use_pool:
        return out_flat.reshape(N, Cout, Ho, Wo)
    return out_flat.reshape(N, Cout, H, W)


def _reference_forward(x_nchw, w, b, bn_params, *, use_bn, act_type, use_pool):
    """Pure-JAX (f32) reference of the PyTorch forward for correctness check."""
    conv = lax.conv_general_dilated(
        x_nchw, w, window_strides=(1, 1), padding=((1, 1), (1, 1)),
        dimension_numbers=('NCHW', 'OIHW', 'NCHW'))
    y = conv + b[None, :, None, None]
    if use_bn:
        gamma, beta, mean, var, eps = bn_params
        y = (y - mean[None, :, None, None]) / jnp.sqrt(var[None, :, None, None] + eps)
        y = y * gamma[None, :, None, None] + beta[None, :, None, None]
    if act_type == 'LReLU':
        y = jnp.where(y >= 0, y, 0.2 * y)
    elif act_type == 'Tanh':
        y = jnp.tanh(y)
    if use_pool:
        N, C, H, W = y.shape
        y = y.reshape(N, C, H // 2, 2, W // 2, 2).mean(axis=(3, 5))
    return y


if __name__ == "__main__":
    # Small shapes consistent with the module: N=2, in=4, out=8, spatial 16x16.
    N, Cin, Cout, H, W = 2, 4, 8, 16, 16

    key = jax.random.PRNGKey(0)
    kx, kw, kb, kg, kbe, km, kv = jax.random.split(key, 7)

    x = jax.random.normal(kx, (N, Cin, H, W), jnp.float32)
    w = jax.random.normal(kw, (Cout, Cin, 3, 3), jnp.float32) * 0.1
    b = jax.random.normal(kb, (Cout,), jnp.float32) * 0.1
    gamma = 1.0 + 0.1 * jax.random.normal(kg, (Cout,), jnp.float32)
    beta = 0.1 * jax.random.normal(kbe, (Cout,), jnp.float32)
    running_mean = 0.1 * jax.random.normal(km, (Cout,), jnp.float32)
    running_var = 0.5 + jnp.abs(jax.random.normal(kv, (Cout,), jnp.float32)) * 0.5
    eps = 1e-5
    bn_params = (gamma, beta, running_mean, running_var, eps)

    # Tolerances sized for the bf16 MXU path (f32 accumulate / f32 epilogue).
    RTOL = ATOL = 3e-2

    # Config 1: Conv -> BN -> LeakyReLU(0.2) -> AvgPool2d(2)  (module defaults)
    out = encode_block_forward(x, w, b, bn_params, use_bn=True,
                               act_type='LReLU', use_pool=True)
    out = jax.block_until_ready(out)
    ref = _reference_forward(x, w, b, bn_params, use_bn=True,
                             act_type='LReLU', use_pool=True)
    assert out.shape == (N, Cout, H // 2, W // 2), out.shape
    assert jnp.allclose(out, ref, rtol=RTOL, atol=ATOL), \
        float(jnp.max(jnp.abs(out - ref)))

    # Config 2: Conv -> Tanh (no BN, no pool) exercises the other branches.
    out2 = encode_block_forward(x, w, b, None, use_bn=False,
                                act_type='Tanh', use_pool=False)
    out2 = jax.block_until_ready(out2)
    ref2 = _reference_forward(x, w, b, None, use_bn=False,
                              act_type='Tanh', use_pool=False)
    assert out2.shape == (N, Cout, H, W), out2.shape
    assert jnp.allclose(out2, ref2, rtol=RTOL, atol=ATOL), \
        float(jnp.max(jnp.abs(out2 - ref2)))

    print("KERNEL_OK")
</pallas_src>

<mosaic_0001>
module attributes {stable_mosaic.version = 11 : i64} {
  func.func @_encode_block_kernel(%arg0: i32, %arg1: memref<1x4x256xf32, #tpu.memory_space<vmem>>, %arg2: memref<8x36xbf16, #tpu.memory_space<vmem>>, %arg3: memref<8x1xf32, #tpu.memory_space<vmem>>, %arg4: memref<8x1xf32, #tpu.memory_space<vmem>>, %arg5: memref<9x256xbf16, #tpu.memory_space<vmem>>, %arg6: memref<256x64xbf16, #tpu.memory_space<vmem>>, %arg7: memref<1x8x64xf32, #tpu.memory_space<vmem>>, %arg8: memref<1x36x256xf32, #tpu.memory_space<vmem>>) attributes {dimension_semantics = [#tpu.dimension_semantics<parallel>], iteration_bounds = array<i64: 2>, scalar_prefetch = 0 : i64, scratch_operands = 1 : i64, tpu.core_type = #tpu.core_type<tc>, window_params = [{transform_indices = @transform_0, window_bounds = array<i64: 1, 4, 256>}, {pipeline_mode = #tpu.pipeline_mode<synchronous>, transform_indices = @transform_1, window_bounds = array<i64: 8, 36>}, {pipeline_mode = #tpu.pipeline_mode<synchronous>, transform_indices = @transform_2, window_bounds = array<i64: 8, 1>}, {pipeline_mode = #tpu.pipeline_mode<synchronous>, transform_indices = @transform_3, window_bounds = array<i64: 8, 1>}, {pipeline_mode = #tpu.pipeline_mode<synchronous>, transform_indices = @transform_4, window_bounds = array<i64: 9, 256>}, {pipeline_mode = #tpu.pipeline_mode<synchronous>, transform_indices = @transform_5, window_bounds = array<i64: 256, 64>}, {transform_indices = @transform_6, window_bounds = array<i64: 1, 8, 64>}]} {
    %c0 = arith.constant 0 : index
    %c0_0 = arith.constant 0 : index
    %c0_1 = arith.constant 0 : index
    %0 = vector.load %arg1[%c0, %c0_0, %c0_1] : memref<1x4x256xf32, #tpu.memory_space<vmem>>, vector<1x4x256xf32>
    %c0_2 = arith.constant 0 : index
    %c0_3 = arith.constant 0 : index
    %1 = vector.load %arg5[%c0_2, %c0_3] : memref<9x256xbf16, #tpu.memory_space<vmem>>, vector<9x256xbf16>
    %2 = arith.extf %1 : vector<9x256xbf16> to vector<9x256xf32>
    %c0_4 = arith.constant 0 : index
    %c0_5 = arith.constant 0 : index
    %3 = vector.load %arg2[%c0_4, %c0_5] : memref<8x36xbf16, #tpu.memory_space<vmem>>, vector<8x36xbf16>
    %c0_6 = arith.constant 0 : index
    %c0_7 = arith.constant 0 : index
    %4 = vector.load %arg3[%c0_6, %c0_7] : memref<8x1xf32, #tpu.memory_space<vmem>>, vector<8x1xf32>
    %c0_8 = arith.constant 0 : index
    %c0_9 = arith.constant 0 : index
    %5 = vector.load %arg4[%c0_8, %c0_9] : memref<8x1xf32, #tpu.memory_space<vmem>>, vector<8x1xf32>
    %c0_10 = arith.constant 0 : index
    %c0_11 = arith.constant 0 : index
    %6 = vector.load %arg6[%c0_10, %c0_11] : memref<256x64xbf16, #tpu.memory_space<vmem>>, vector<256x64xbf16>
    %c17_i32 = arith.constant 17 : i32
    %7 = tpu.dynamic_rotate %0 by %c17_i32 dim 2 : vector<1x4x256xf32>, i32 -> vector<1x4x256xf32>
    %8 = vector.extract_strided_slice %2 {offsets = [0, 0], sizes = [1, 256], strides = [1, 1]} : vector<9x256xf32> to vector<1x256xf32>
    %9 = vector.shape_cast %8 : vector<1x256xf32> to vector<256xf32>
    %10 = vector.shape_cast %9 : vector<256xf32> to vector<1x1x256xf32>
    %11 = vector.broadcast %10 : vector<1x1x256xf32> to vector<1x4x256xf32>
    %12 = arith.mulf %7, %11 : vector<1x4x256xf32>
    %c0_12 = arith.constant 0 : index
    %c0_13 = arith.constant 0 : index
    %c0_14 = arith.constant 0 : index
    %13 = vector.load %arg8[%c0_12, %c0_13, %c0_14] : memref<1x36x256xf32, #tpu.memory_space<vmem>>, vector<1x4x256xf32>
    tpu.vector_store %arg8[%c0_12, %c0_13, %c0_14], %12 {strides = array<i32>} : memref<1x36x256xf32, #tpu.memory_space<vmem>>, vector<1x4x256xf32>,
    %c16_i32 = arith.constant 16 : i32
    %14 = tpu.dynamic_rotate %0 by %c16_i32 dim 2 : vector<1x4x256xf32>, i32 -> vector<1x4x256xf32>
    %15 = vector.extract_strided_slice %2 {offsets = [1, 0], sizes = [1, 256], strides = [1, 1]} : vector<9x256xf32> to vector<1x256xf32>
    %16 = vector.shape_cast %15 : vector<1x256xf32> to vector<256xf32>
    %17 = vector.shape_cast %16 : vector<256xf32> to vector<1x1x256xf32>
    %18 = vector.broadcast %17 : vector<1x1x256xf32> to vector<1x4x256xf32>
    %19 = arith.mulf %14, %18 : vector<1x4x256xf32>
    %c0_15 = arith.constant 0 : index
    %c4 = arith.constant 4 : index
    %c0_16 = arith.constant 0 : index
    %20 = vector.load %arg8[%c0_15, %c4, %c0_16] : memref<1x36x256xf32, #tpu.memory_space<vmem>>, vector<1x4x256xf32>
    tpu.vector_store %arg8[%c0_15, %c4, %c0_16], %19 {strides = array<i32>} : memref<1x36x256xf32, #tpu.memory_space<vmem>>, vector<1x4x256xf32>,
    %c15_i32 = arith.constant 15 : i32
    %21 = tpu.dynamic_rotate %0 by %c15_i32 dim 2 : vector<1x4x256xf32>, i32 -> vector<1x4x256xf32>
    %22 = vector.extract_strided_slice %2 {offsets = [2, 0], sizes = [1, 256], strides = [1, 1]} : vector<9x256xf32> to vector<1x256xf32>
    %23 = vector.shape_cast %22 : vector<1x256xf32> to vector<256xf32>
    %24 = vector.shape_cast %23 : vector<256xf32> to vector<1x1x256xf32>
    %25 = vector.broadcast %24 : vector<1x1x256xf32> to vector<1x4x256xf32>
    %26 = arith.mulf %21, %25 : vector<1x4x256xf32>
    %c0_17 = arith.constant 0 : index
    %c8 = arith.constant 8 : index
    %c0_18 = arith.constant 0 : index
    %27 = vector.load %arg8[%c0_17, %c8, %c0_18] : memref<1x36x256xf32, #tpu.memory_space<vmem>>, vector<1x4x256xf32>
    tpu.vector_store %arg8[%c0_17, %c8, %c0_18], %26 {strides = array<i32>} : memref<1x36x256xf32, #tpu.memory_space<vmem>>, vector<1x4x256xf32>,
    %c1_i32 = arith.constant 1 : i32
    %28 = tpu.dynamic_rotate %0 by %c1_i32 dim 2 : vector<1x4x256xf32>, i32 -> vector<1x4x256xf32>
    %29 = vector.extract_strided_slice %2 {offsets = [3, 0], sizes = [1, 256], strides = [1, 1]} : vector<9x256xf32> to vector<1x256xf32>
    %30 = vector.shape_cast %29 : vector<1x256xf32> to vector<256xf32>
    %31 = vector.shape_cast %30 : vector<256xf32> to vector<1x1x256xf32>
    %32 = vector.broadcast %31 : vector<1x1x256xf32> to vector<1x4x256xf32>
    %33 = arith.mulf %28, %32 : vector<1x4x256xf32>
    %c0_19 = arith.constant 0 : index
    %c12 = arith.constant 12 : index
    %c0_20 = arith.constant 0 : index
    %34 = vector.load %arg8[%c0_19, %c12, %c0_20] : memref<1x36x256xf32, #tpu.memory_space<vmem>>, vector<1x4x256xf32>
    tpu.vector_store %arg8[%c0_19, %c12, %c0_20], %33 {strides = array<i32>} : memref<1x36x256xf32, #tpu.memory_space<vmem>>, vector<1x4x256xf32>,
    %35 = vector.extract_strided_slice %2 {offsets = [4, 0], sizes = [1, 256], strides = [1, 1]} : vector<9x256xf32> to vector<1x256xf32>
    %36 = vector.shape_cast %35 : vector<1x256xf32> to vector<256xf32>
    %37 = vector.shape_cast %36 : vector<256xf32> to vector<1x1x256xf32>
    %38 = vector.broadcast %37 : vector<1x1x256xf32> to vector<1x4x256xf32>
    %39 = arith.mulf %0, %38 : vector<1x4x256xf32>
    %c0_21 = arith.constant 0 : index
    %c16 = arith.constant 16 : index
    %c0_22 = arith.constant 0 : index
    %40 = vector.load %arg8[%c0_21, %c16, %c0_22] : memref<1x36x256xf32, #tpu.memory_space<vmem>>, vector<1x4x256xf32>
    tpu.vector_store %arg8[%c0_21, %c16, %c0_22], %39 {strides = array<i32>} : memref<1x36x256xf32, #tpu.memory_space<vmem>>, vector<1x4x256xf32>,
    %c255_i32 = arith.constant 255 : i32
    %41 = tpu.dynamic_rotate %0 by %c255_i32 dim 2 : vector<1x4x256xf32>, i32 -> vector<1x4x256xf32>
    %42 = vector.extract_strided_slice %2 {offsets = [5, 0], sizes = [1, 256], strides = [1, 1]} : vector<9x256xf32> to vector<1x256xf32>
    %43 = vector.shape_cast %42 : vector<1x256xf32> to vector<256xf32>
    %44 = vector.shape_cast %43 : vector<256xf32> to vector<1x1x256xf32>
    %45 = vector.broadcast %44 : vector<1x1x256xf32> to vector<1x4x256xf32>
    %46 = arith.mulf %41, %45 : vector<1x4x256xf32>
    %c0_23 = arith.constant 0 : index
    %c20 = arith.constant 20 : index
    %c0_24 = arith.constant 0 : index
    %47 = vector.load %arg8[%c0_23, %c20, %c0_24] : memref<1x36x256xf32, #tpu.memory_space<vmem>>, vector<1x4x256xf32>
    tpu.vector_store %arg8[%c0_23, %c20, %c0_24], %46 {strides = array<i32>} : memref<1x36x256xf32, #tpu.memory_space<vmem>>, vector<1x4x256xf32>,
    %c241_i32 = arith.constant 241 : i32
    %48 = tpu.dynamic_rotate %0 by %c241_i32 dim 2 : vector<1x4x256xf32>, i32 -> vector<1x4x256xf32>
    %49 = vector.extract_strided_slice %2 {offsets = [6, 0], sizes = [1, 256], strides = [1, 1]} : vector<9x256xf32> to vector<1x256xf32>
    %50 = vector.shape_cast %49 : vector<1x256xf32> to vector<256xf32>
    %51 = vector.shape_cast %50 : vector<256xf32> to vector<1x1x256xf32>
    %52 = vector.broadcast %51 : vector<1x1x256xf32> to vector<1x4x256xf32>
    %53 = arith.mulf %48, %52 : vector<1x4x256xf32>
    %c0_25 = arith.constant 0 : index
    %c24 = arith.constant 24 : index
    %c0_26 = arith.constant 0 : index
    %54 = vector.load %arg8[%c0_25, %c24, %c0_26] : memref<1x36x256xf32, #tpu.memory_space<vmem>>, vector<1x4x256xf32>
    tpu.vector_store %arg8[%c0_25, %c24, %c0_26], %53 {strides = array<i32>} : memref<1x36x256xf32, #tpu.memory_space<vmem>>, vector<1x4x256xf32>,
    %c240_i32 = arith.constant 240 : i32
    %55 = tpu.dynamic_rotate %0 by %c240_i32 dim 2 : vector<1x4x256xf32>, i32 -> vector<1x4x256xf32>
    %56 = vector.extract_strided_slice %2 {offsets = [7, 0], sizes = [1, 256], strides = [1, 1]} : vector<9x256xf32> to vector<1x256xf32>
    %57 = vector.shape_cast %56 : vector<1x256xf32> to vector<256xf32>
    %58 = vector.shape_cast %57 : vector<256xf32> to vector<1x1x256xf32>
    %59 = vector.broadcast %58 : vector<1x1x256xf32> to vector<1x4x256xf32>
    %60 = arith.mulf %55, %59 : vector<1x4x256xf32>
    %c0_27 = arith.constant 0 : index
    %c28 = arith.constant 28 : index
    %c0_28 = arith.constant 0 : index
    %61 = vector.load %arg8[%c0_27, %c28, %c0_28] : memref<1x36x256xf32, #tpu.memory_space<vmem>>, vector<1x4x256xf32>
    tpu.vector_store %arg8[%c0_27, %c28, %c0_28], %60 {strides = array<i32>} : memref<1x36x256xf32, #tpu.memory_space<vmem>>, vector<1x4x256xf32>,
    %c239_i32 = arith.constant 239 : i32
    %62 = tpu.dynamic_rotate %0 by %c239_i32 dim 2 : vector<1x4x256xf32>, i32 -> vector<1x4x256xf32>
    %63 = vector.extract_strided_slice %2 {offsets = [8, 0], sizes = [1, 256], strides = [1, 1]} : vector<9x256xf32> to vector<1x256xf32>
    %64 = vector.shape_cast %63 : vector<1x256xf32> to vector<256xf32>
    %65 = vector.shape_cast %64 : vector<256xf32> to vector<1x1x256xf32>
    %66 = vector.broadcast %65 : vector<1x1x256xf32> to vector<1x4x256xf32>
    %67 = arith.mulf %62, %66 : vector<1x4x256xf32>
    %c0_29 = arith.constant 0 : index
    %c32 = arith.constant 32 : index
    %c0_30 = arith.constant 0 : index
    %68 = vector.load %arg8[%c0_29, %c32, %c0_30] : memref<1x36x256xf32, #tpu.memory_space<vmem>>, vector<1x4x256xf32>
    tpu.vector_store %arg8[%c0_29, %c32, %c0_30], %67 {strides = array<i32>} : memref<1x36x256xf32, #tpu.memory_space<vmem>>, vector<1x4x256xf32>,
    %c0_31 = arith.constant 0 : index
    %c0_32 = arith.constant 0 : index
    %c0_33 = arith.constant 0 : index
    %69 = vector.load %arg8[%c0_31, %c0_32, %c0_33] : memref<1x36x256xf32, #tpu.memory_space<vmem>>, vector<1x36x256xf32>
    %70 = vector.shape_cast %69 : vector<1x36x256xf32> to vector<36x256xf32>
    %71 = arith.truncf %70 : vector<36x256xf32> to vector<36x256xbf16>
    %cst = arith.constant dense<0.000000e+00> : vector<8x256xf32>
    %72 = tpu.matmul %3, %71, %cst {dimension_numbers = #tpu.dot_dimension_numbers<[1], [0], [0], [1], [0, 0, 1, 1], [], []>} : vector<8x36xbf16>, vector<36x256xbf16>, vector<8x256xf32> -> vector<8x256xf32>
    %73 = vector.broadcast %4 : vector<8x1xf32> to vector<8x256xf32>
    %74 = arith.mulf %72, %73 : vector<8x256xf32>
    %75 = vector.broadcast %5 : vector<8x1xf32> to vector<8x256xf32>
    %76 = arith.addf %74, %75 : vector<8x256xf32>
    %cst_34 = arith.constant 0.000000e+00 : f32
    %77 = vector.broadcast %cst_34 : f32 to vector<8x256xf32>
    %78 = arith.cmpf oge, %76, %77 : vector<8x256xf32>
    %cst_35 = arith.constant 2.000000e-01 : f32
    %79 = vector.broadcast %cst_35 : f32 to vector<8x256xf32>
    %80 = arith.mulf %79, %76 : vector<8x256xf32>
    %81 = arith.select %78, %76, %80 : vector<8x256xi1>, vector<8x256xf32>
    %82 = arith.truncf %81 : vector<8x256xf32> to vector<8x256xbf16>
    %cst_36 = arith.constant dense<0.000000e+00> : vector<8x64xf32>
    %83 = tpu.matmul %82, %6, %cst_36 {dimension_numbers = #tpu.dot_dimension_numbers<[1], [0], [0], [1], [0, 0, 1, 1], [], []>} : vector<8x256xbf16>, vector<256x64xbf16>, vector<8x64xf32> -> vector<8x64xf32>
    %c0_37 = arith.constant 0 : index
    %c0_38 = arith.constant 0 : index
    %c0_39 = arith.constant 0 : index
    %84 = vector.load %arg7[%c0_37, %c0_38, %c0_39] : memref<1x8x64xf32, #tpu.memory_space<vmem>>, vector<1x8x64xf32>
    %85 = vector.shape_cast %84 : vector<1x8x64xf32> to vector<8x64xf32>
    %86 = vector.shape_cast %83 : vector<8x64xf32> to vector<1x8x64xf32>
    tpu.vector_store %arg7[%c0_37, %c0_38, %c0_39], %86 {strides = array<i32>} : memref<1x8x64xf32, #tpu.memory_space<vmem>>, vector<1x8x64xf32>,
    return
  }
  func.func @transform_0(%arg0: i32) -> (i32, i32, i32) {
    %c0_i32 = arith.constant 0 : i32
    %c0_i32_0 = arith.constant 0 : i32
    %c0_i32_1 = arith.constant 0 : i32
    return %arg0, %c0_i32, %c0_i32_0 : i32, i32, i32
  }
  func.func @transform_1(%arg0: i32) -> (i32, i32) {
    %c0_i32 = arith.constant 0 : i32
    %c0_i32_0 = arith.constant 0 : i32
    %c0_i32_1 = arith.constant 0 : i32
    return %c0_i32, %c0_i32_0 : i32, i32
  }
  func.func @transform_2(%arg0: i32) -> (i32, i32) {
    %c0_i32 = arith.constant 0 : i32
    %c0_i32_0 = arith.constant 0 : i32
    %c0_i32_1 = arith.constant 0 : i32
    return %c0_i32, %c0_i32_0 : i32, i32
  }
  func.func @transform_3(%arg0: i32) -> (i32, i32) {
    %c0_i32 = arith.constant 0 : i32
    %c0_i32_0 = arith.constant 0 : i32
    %c0_i32_1 = arith.constant 0 : i32
    return %c0_i32, %c0_i32_0 : i32, i32
  }
  func.func @transform_4(%arg0: i32) -> (i32, i32) {
    %c0_i32 = arith.constant 0 : i32
    %c0_i32_0 = arith.constant 0 : i32
    %c0_i32_1 = arith.constant 0 : i32
    return %c0_i32, %c0_i32_0 : i32, i32
  }
  func.func @transform_5(%arg0: i32) -> (i32, i32) {
    %c0_i32 = arith.constant 0 : i32
    %c0_i32_0 = arith.constant 0 : i32
    %c0_i32_1 = arith.constant 0 : i32
    return %c0_i32, %c0_i32_0 : i32, i32
  }
  func.func @transform_6(%arg0: i32) -> (i32, i32, i32) {
    %c0_i32 = arith.constant 0 : i32
    %c0_i32_0 = arith.constant 0 : i32
    %c0_i32_1 = arith.constant 0 : i32
    return %arg0, %c0_i32, %c0_i32_0 : i32, i32, i32
  }
}

module attributes {stable_mosaic.version = 11 : i64} {
  func.func @_encode_block_kernel(%arg0: i32, %arg1: memref<1x4x256xf32, #tpu.memory_space<vmem>>, %arg2: memref<8x36xbf16, #tpu.memory_space<vmem>>, %arg3: memref<8x1xf32, #tpu.memory_space<vmem>>, %arg4: memref<8x1xf32, #tpu.memory_space<vmem>>, %arg5: memref<9x256xbf16, #tpu.memory_space<vmem>>, %arg6: memref<256x64xbf16, #tpu.memory_space<vmem>>, %arg7: memref<1x8x64xf32, #tpu.memory_space<vmem>>, %arg8: memref<1x36x256xf32, #tpu.memory_space<vmem>>) attributes {dimension_semantics = [#tpu.dimension_semantics<parallel>], iteration_bounds = array<i64: 2>, scalar_prefetch = 0 : i64, scratch_operands = 1 : i64, tpu.core_type = #tpu.core_type<tc>, window_params = [{transform_indices = @transform_0, window_bounds = array<i64: 1, 4, 256>}, {pipeline_mode = #tpu.pipeline_mode<synchronous>, transform_indices = @transform_1, window_bounds = array<i64: 8, 36>}, {pipeline_mode = #tpu.pipeline_mode<synchronous>, transform_indices = @transform_2, window_bounds = array<i64: 8, 1>}, {pipeline_mode = #tpu.pipeline_mode<synchronous>, transform_indices = @transform_3, window_bounds = array<i64: 8, 1>}, {pipeline_mode = #tpu.pipeline_mode<synchronous>, transform_indices = @transform_4, window_bounds = array<i64: 9, 256>}, {pipeline_mode = #tpu.pipeline_mode<synchronous>, transform_indices = @transform_5, window_bounds = array<i64: 256, 64>}, {transform_indices = @transform_6, window_bounds = array<i64: 1, 8, 64>}]} {
    %c0 = arith.constant 0 : index
    %c0_0 = arith.constant 0 : index
    %c0_1 = arith.constant 0 : index
    %0 = vector.load %arg1[%c0, %c0_0, %c0_1] : memref<1x4x256xf32, #tpu.memory_space<vmem>>, vector<1x4x256xf32>
    %c0_2 = arith.constant 0 : index
    %c0_3 = arith.constant 0 : index
    %1 = vector.load %arg5[%c0_2, %c0_3] : memref<9x256xbf16, #tpu.memory_space<vmem>>, vector<9x256xbf16>
    %2 = arith.extf %1 : vector<9x256xbf16> to vector<9x256xf32>
    %c0_4 = arith.constant 0 : index
    %c0_5 = arith.constant 0 : index
    %3 = vector.load %arg2[%c0_4, %c0_5] : memref<8x36xbf16, #tpu.memory_space<vmem>>, vector<8x36xbf16>
    %c0_6 = arith.constant 0 : index
    %c0_7 = arith.constant 0 : index
    %4 = vector.load %arg3[%c0_6, %c0_7] : memref<8x1xf32, #tpu.memory_space<vmem>>, vector<8x1xf32>
    %c0_8 = arith.constant 0 : index
    %c0_9 = arith.constant 0 : index
    %5 = vector.load %arg4[%c0_8, %c0_9] : memref<8x1xf32, #tpu.memory_space<vmem>>, vector<8x1xf32>
    %c0_10 = arith.constant 0 : index
    %c0_11 = arith.constant 0 : index
    %6 = vector.load %arg6[%c0_10, %c0_11] : memref<256x64xbf16, #tpu.memory_space<vmem>>, vector<256x64xbf16>
    %c17_i32 = arith.constant 17 : i32
    %7 = tpu.dynamic_rotate %0 by %c17_i32 dim 2 : vector<1x4x256xf32>, i32 -> vector<1x4x256xf32>
    %8 = vector.extract_strided_slice %2 {offsets = [0, 0], sizes = [1, 256], strides = [1, 1]} : vector<9x256xf32> to vector<1x256xf32>
    %9 = vector.shape_cast %8 : vector<1x256xf32> to vector<256xf32>
    %10 = vector.shape_cast %9 : vector<256xf32> to vector<1x1x256xf32>
    %11 = vector.broadcast %10 : vector<1x1x256xf32> to vector<1x4x256xf32>
    %12 = arith.mulf %7, %11 : vector<1x4x256xf32>
    %c0_12 = arith.constant 0 : index
    %c0_13 = arith.constant 0 : index
    %c0_14 = arith.constant 0 : index
    %13 = vector.load %arg8[%c0_12, %c0_13, %c0_14] : memref<1x36x256xf32, #tpu.memory_space<vmem>>, vector<1x4x256xf32>
    tpu.vector_store %arg8[%c0_12, %c0_13, %c0_14], %12 {strides = array<i32>} : memref<1x36x256xf32, #tpu.memory_space<vmem>>, vector<1x4x256xf32>,
    %c16_i32 = arith.constant 16 : i32
    %14 = tpu.dynamic_rotate %0 by %c16_i32 dim 2 : vector<1x4x256xf32>, i32 -> vector<1x4x256xf32>
    %15 = vector.extract_strided_slice %2 {offsets = [1, 0], sizes = [1, 256], strides = [1, 1]} : vector<9x256xf32> to vector<1x256xf32>
    %16 = vector.shape_cast %15 : vector<1x256xf32> to vector<256xf32>
    %17 = vector.shape_cast %16 : vector<256xf32> to vector<1x1x256xf32>
    %18 = vector.broadcast %17 : vector<1x1x256xf32> to vector<1x4x256xf32>
    %19 = arith.mulf %14, %18 : vector<1x4x256xf32>
    %c0_15 = arith.constant 0 : index
    %c4 = arith.constant 4 : index
    %c0_16 = arith.constant 0 : index
    %20 = vector.load %arg8[%c0_15, %c4, %c0_16] : memref<1x36x256xf32, #tpu.memory_space<vmem>>, vector<1x4x256xf32>
    tpu.vector_store %arg8[%c0_15, %c4, %c0_16], %19 {strides = array<i32>} : memref<1x36x256xf32, #tpu.memory_space<vmem>>, vector<1x4x256xf32>,
    %c15_i32 = arith.constant 15 : i32
    %21 = tpu.dynamic_rotate %0 by %c15_i32 dim 2 : vector<1x4x256xf32>, i32 -> vector<1x4x256xf32>
    %22 = vector.extract_strided_slice %2 {offsets = [2, 0], sizes = [1, 256], strides = [1, 1]} : vector<9x256xf32> to vector<1x256xf32>
    %23 = vector.shape_cast %22 : vector<1x256xf32> to vector<256xf32>
    %24 = vector.shape_cast %23 : vector<256xf32> to vector<1x1x256xf32>
    %25 = vector.broadcast %24 : vector<1x1x256xf32> to vector<1x4x256xf32>
    %26 = arith.mulf %21, %25 : vector<1x4x256xf32>
    %c0_17 = arith.constant 0 : index
    %c8 = arith.constant 8 : index
    %c0_18 = arith.constant 0 : index
    %27 = vector.load %arg8[%c0_17, %c8, %c0_18] : memref<1x36x256xf32, #tpu.memory_space<vmem>>, vector<1x4x256xf32>
    tpu.vector_store %arg8[%c0_17, %c8, %c0_18], %26 {strides = array<i32>} : memref<1x36x256xf32, #tpu.memory_space<vmem>>, vector<1x4x256xf32>,
    %c1_i32 = arith.constant 1 : i32
    %28 = tpu.dynamic_rotate %0 by %c1_i32 dim 2 : vector<1x4x256xf32>, i32 -> vector<1x4x256xf32>
    %29 = vector.extract_strided_slice %2 {offsets = [3, 0], sizes = [1, 256], strides = [1, 1]} : vector<9x256xf32> to vector<1x256xf32>
    %30 = vector.shape_cast %29 : vector<1x256xf32> to vector<256xf32>
    %31 = vector.shape_cast %30 : vector<256xf32> to vector<1x1x256xf32>
    %32 = vector.broadcast %31 : vector<1x1x256xf32> to vector<1x4x256xf32>
    %33 = arith.mulf %28, %32 : vector<1x4x256xf32>
    %c0_19 = arith.constant 0 : index
    %c12 = arith.constant 12 : index
    %c0_20 = arith.constant 0 : index
    %34 = vector.load %arg8[%c0_19, %c12, %c0_20] : memref<1x36x256xf32, #tpu.memory_space<vmem>>, vector<1x4x256xf32>
    tpu.vector_store %arg8[%c0_19, %c12, %c0_20], %33 {strides = array<i32>} : memref<1x36x256xf32, #tpu.memory_space<vmem>>, vector<1x4x256xf32>,
    %35 = vector.extract_strided_slice %2 {offsets = [4, 0], sizes = [1, 256], strides = [1, 1]} : vector<9x256xf32> to vector<1x256xf32>
    %36 = vector.shape_cast %35 : vector<1x256xf32> to vector<256xf32>
    %37 = vector.shape_cast %36 : vector<256xf32> to vector<1x1x256xf32>
    %38 = vector.broadcast %37 : vector<1x1x256xf32> to vector<1x4x256xf32>
    %39 = arith.mulf %0, %38 : vector<1x4x256xf32>
    %c0_21 = arith.constant 0 : index
    %c16 = arith.constant 16 : index
    %c0_22 = arith.constant 0 : index
    %40 = vector.load %arg8[%c0_21, %c16, %c0_22] : memref<1x36x256xf32, #tpu.memory_space<vmem>>, vector<1x4x256xf32>
    tpu.vector_store %arg8[%c0_21, %c16, %c0_22], %39 {strides = array<i32>} : memref<1x36x256xf32, #tpu.memory_space<vmem>>, vector<1x4x256xf32>,
    %c255_i32 = arith.constant 255 : i32
    %41 = tpu.dynamic_rotate %0 by %c255_i32 dim 2 : vector<1x4x256xf32>, i32 -> vector<1x4x256xf32>
    %42 = vector.extract_strided_slice %2 {offsets = [5, 0], sizes = [1, 256], strides = [1, 1]} : vector<9x256xf32> to vector<1x256xf32>
    %43 = vector.shape_cast %42 : vector<1x256xf32> to vector<256xf32>
    %44 = vector.shape_cast %43 : vector<256xf32> to vector<1x1x256xf32>
    %45 = vector.broadcast %44 : vector<1x1x256xf32> to vector<1x4x256xf32>
    %46 = arith.mulf %41, %45 : vector<1x4x256xf32>
    %c0_23 = arith.constant 0 : index
    %c20 = arith.constant 20 : index
    %c0_24 = arith.constant 0 : index
    %47 = vector.load %arg8[%c0_23, %c20, %c0_24] : memref<1x36x256xf32, #tpu.memory_space<vmem>>, vector<1x4x256xf32>
    tpu.vector_store %arg8[%c0_23, %c20, %c0_24], %46 {strides = array<i32>} : memref<1x36x256xf32, #tpu.memory_space<vmem>>, vector<1x4x256xf32>,
    %c241_i32 = arith.constant 241 : i32
    %48 = tpu.dynamic_rotate %0 by %c241_i32 dim 2 : vector<1x4x256xf32>, i32 -> vector<1x4x256xf32>
    %49 = vector.extract_strided_slice %2 {offsets = [6, 0], sizes = [1, 256], strides = [1, 1]} : vector<9x256xf32> to vector<1x256xf32>
    %50 = vector.shape_cast %49 : vector<1x256xf32> to vector<256xf32>
    %51 = vector.shape_cast %50 : vector<256xf32> to vector<1x1x256xf32>
    %52 = vector.broadcast %51 : vector<1x1x256xf32> to vector<1x4x256xf32>
    %53 = arith.mulf %48, %52 : vector<1x4x256xf32>
    %c0_25 = arith.constant 0 : index
    %c24 = arith.constant 24 : index
    %c0_26 = arith.constant 0 : index
    %54 = vector.load %arg8[%c0_25, %c24, %c0_26] : memref<1x36x256xf32, #tpu.memory_space<vmem>>, vector<1x4x256xf32>
    tpu.vector_store %arg8[%c0_25, %c24, %c0_26], %53 {strides = array<i32>} : memref<1x36x256xf32, #tpu.memory_space<vmem>>, vector<1x4x256xf32>,
    %c240_i32 = arith.constant 240 : i32
    %55 = tpu.dynamic_rotate %0 by %c240_i32 dim 2 : vector<1x4x256xf32>, i32 -> vector<1x4x256xf32>
    %56 = vector.extract_strided_slice %2 {offsets = [7, 0], sizes = [1, 256], strides = [1, 1]} : vector<9x256xf32> to vector<1x256xf32>
    %57 = vector.shape_cast %56 : vector<1x256xf32> to vector<256xf32>
    %58 = vector.shape_cast %57 : vector<256xf32> to vector<1x1x256xf32>
    %59 = vector.broadcast %58 : vector<1x1x256xf32> to vector<1x4x256xf32>
    %60 = arith.mulf %55, %59 : vector<1x4x256xf32>
    %c0_27 = arith.constant 0 : index
    %c28 = arith.constant 28 : index
    %c0_28 = arith.constant 0 : index
    %61 = vector.load %arg8[%c0_27, %c28, %c0_28] : memref<1x36x256xf32, #tpu.memory_space<vmem>>, vector<1x4x256xf32>
    tpu.vector_store %arg8[%c0_27, %c28, %c0_28], %60 {strides = array<i32>} : memref<1x36x256xf32, #tpu.memory_space<vmem>>, vector<1x4x256xf32>,
    %c239_i32 = arith.constant 239 : i32
    %62 = tpu.dynamic_rotate %0 by %c239_i32 dim 2 : vector<1x4x256xf32>, i32 -> vector<1x4x256xf32>
    %63 = vector.extract_strided_slice %2 {offsets = [8, 0], sizes = [1, 256], strides = [1, 1]} : vector<9x256xf32> to vector<1x256xf32>
    %64 = vector.shape_cast %63 : vector<1x256xf32> to vector<256xf32>
    %65 = vector.shape_cast %64 : vector<256xf32> to vector<1x1x256xf32>
    %66 = vector.broadcast %65 : vector<1x1x256xf32> to vector<1x4x256xf32>
    %67 = arith.mulf %62, %66 : vector<1x4x256xf32>
    %c0_29 = arith.constant 0 : index
    %c32 = arith.constant 32 : index
    %c0_30 = arith.constant 0 : index
    %68 = vector.load %arg8[%c0_29, %c32, %c0_30] : memref<1x36x256xf32, #tpu.memory_space<vmem>>, vector<1x4x256xf32>
    tpu.vector_store %arg8[%c0_29, %c32, %c0_30], %67 {strides = array<i32>} : memref<1x36x256xf32, #tpu.memory_space<vmem>>, vector<1x4x256xf32>,
    %c0_31 = arith.constant 0 : index
    %c0_32 = arith.constant 0 : index
    %c0_33 = arith.constant 0 : index
    %69 = vector.load %arg8[%c0_31, %c0_32, %c0_33] : memref<1x36x256xf32, #tpu.memory_space<vmem>>, vector<1x36x256xf32>
    %70 = vector.shape_cast %69 : vector<1x36x256xf32> to vector<36x256xf32>
    %71 = arith.truncf %70 : vector<36x256xf32> to vector<36x256xbf16>
    %cst = arith.constant dense<0.000000e+00> : vector<8x256xf32>
    %72 = tpu.matmul %3, %71, %cst {dimension_numbers = #tpu.dot_dimension_numbers<[1], [0], [0], [1], [0, 0, 1, 1], [], []>} : vector<8x36xbf16>, vector<36x256xbf16>, vector<8x256xf32> -> vector<8x256xf32>
    %73 = vector.broadcast %4 : vector<8x1xf32> to vector<8x256xf32>
    %74 = arith.mulf %72, %73 : vector<8x256xf32>
    %75 = vector.broadcast %5 : vector<8x1xf32> to vector<8x256xf32>
    %76 = arith.addf %74, %75 : vector<8x256xf32>
    %cst_34 = arith.constant 0.000000e+00 : f32
    %77 = vector.broadcast %cst_34 : f32 to vector<8x256xf32>
    %78 = arith.cmpf oge, %76, %77 : vector<8x256xf32>
    %cst_35 = arith.constant 2.000000e-01 : f32
    %79 = vector.broadcast %cst_35 : f32 to vector<8x256xf32>
    %80 = arith.mulf %79, %76 : vector<8x256xf32>
    %81 = arith.select %78, %76, %80 : vector<8x256xi1>, vector<8x256xf32>
    %82 = arith.truncf %81 : vector<8x256xf32> to vector<8x256xbf16>
    %cst_36 = arith.constant dense<0.000000e+00> : vector<8x64xf32>
    %83 = tpu.matmul %82, %6, %cst_36 {dimension_numbers = #tpu.dot_dimension_numbers<[1], [0], [0], [1], [0, 0, 1, 1], [], []>} : vector<8x256xbf16>, vector<256x64xbf16>, vector<8x64xf32> -> vector<8x64xf32>
    %c0_37 = arith.constant 0 : index
    %c0_38 = arith.constant 0 : index
    %c0_39 = arith.constant 0 : index
    %84 = vector.load %arg7[%c0_37, %c0_38, %c0_39] : memref<1x8x64xf32, #tpu.memory_space<vmem>>, vector<1x8x64xf32>
    %85 = vector.shape_cast %84 : vector<1x8x64xf32> to vector<8x64xf32>
    %86 = vector.shape_cast %83 : vector<8x64xf32> to vector<1x8x64xf32>
    tpu.vector_store %arg7[%c0_37, %c0_38, %c0_39], %86 {strides = array<i32>} : memref<1x8x64xf32, #tpu.memory_space<vmem>>, vector<1x8x64xf32>,
    return
  }
  func.func @transform_0(%arg0: i32) -> (i32, i32, i32) {
    %c0_i32 = arith.constant 0 : i32
    %c0_i32_0 = arith.constant 0 : i32
    %c0_i32_1 = arith.constant 0 : i32
    return %arg0, %c0_i32, %c0_i32_0 : i32, i32, i32
  }
  func.func @transform_1(%arg0: i32) -> (i32, i32) {
    %c0_i32 = arith.constant 0 : i32
    %c0_i32_0 = arith.constant 0 : i32
    %c0_i32_1 = arith.constant 0 : i32
    return %c0_i32, %c0_i32_0 : i32, i32
  }
  func.func @transform_2(%arg0: i32) -> (i32, i32) {
    %c0_i32 = arith.constant 0 : i32
    %c0_i32_0 = arith.constant 0 : i32
    %c0_i32_1 = arith.constant 0 : i32
    return %c0_i32, %c0_i32_0 : i32, i32
  }
  func.func @transform_3(%arg0: i32) -> (i32, i32) {
    %c0_i32 = arith.constant 0 : i32
    %c0_i32_0 = arith.constant 0 : i32
    %c0_i32_1 = arith.constant 0 : i32
    return %c0_i32, %c0_i32_0 : i32, i32
  }
  func.func @transform_4(%arg0: i32) -> (i32, i32) {
    %c0_i32 = arith.constant 0 : i32
    %c0_i32_0 = arith.constant 0 : i32
    %c0_i32_1 = arith.constant 0 : i32
    return %c0_i32, %c0_i32_0 : i32, i32
  }
  func.func @transform_5(%arg0: i32) -> (i32, i32) {
    %c0_i32 = arith.constant 0 : i32
    %c0_i32_0 = arith.constant 0 : i32
    %c0_i32_1 = arith.constant 0 : i32
    return %c0_i32, %c0_i32_0 : i32, i32
  }
  func.func @transform_6(%arg0: i32) -> (i32, i32, i32) {
    %c0_i32 = arith.constant 0 : i32
    %c0_i32_0 = arith.constant 0 : i32
    %c0_i32_1 = arith.constant 0 : i32
    return %arg0, %c0_i32, %c0_i32_0 : i32, i32, i32
  }
}

</mosaic_0001>

<bundles_post_ra>
// kernel: tpu_custom_call.1
= control target key start
LH: loop header
LB: loop body
LE: loop exit
PB: predicated region body
PF: predicated region fallthrough
CT: control target
= control target key end

     0   :  { %11 = vsyncpa [#allocation4], 0  ;;  %s1265_s0 = inlined_call_operand.vmem [shape: f32[2,4,256], index: 0, kind: input, shape index: {}]   ;;  %s1266_s1 = inlined_call_operand.vmem [shape: bf16[8,36], index: 1, kind: input, shape index: {}]   ;;  %s1267_s2 = inlined_call_operand.vmem [shape: f32[8,1], index: 2, kind: input, shape index: {}]   ;;  %s1268_s3 = inlined_call_operand.vmem [shape: f32[8,1], index: 3, kind: input, shape index: {}]   ;;  %s1269_s4 = inlined_call_operand.vmem [shape: bf16[9,256], index: 4, kind: input, shape index: {}]   ;;  %s1270_s5 = inlined_call_operand.vmem [shape: bf16[256,64], index: 5, kind: input, shape index: {}]   ;;  %s1271_s6 = inlined_call_operand.hbm [shape: f32[2,8,64], index: 6, kind: output, shape index: {}]  }
   0x1   :  { %13 = vsyncpa [#allocation4 + $0x1], 0  ;;  %s1019_s21 = smov 0   ;;  %s1021_s22 = smov 0  }
   0x2   :  { %s1023_s23 = smov 0   ;;  %s1025_s24 = smov 0  }
   0x3 LB: > { %s1040_s25 = sadd.s32 4294967295, %s972_s24   ;;  %s793_s26 = sadd.s32 4294967294, %s972_s24   ;;  %s972_s24 = sphi %s1025_s24, %s1277_s24   ;;  %s968_s23 = sphi %s1023_s23, %s1276_s23   ;;  %s964_s22 = sphi %s1021_s22, %s1275_s22   ;;  %s960_s21 = sphi %s1019_s21, %s1274_s21  }
   0x4   : > { %s1044_s27 = sadd.s32 1, %s972_s24   ;;  %s157_s28 = sadd.s32 1, %s968_s23 }
   0x5   : > { %s154_s29 = ssub.s32 %s972_s24, %s1044_s27  ;;  %p167_p0 = scmp.ne.s32.totalorder %s968_s23, %s964_s22 }
   0x6   : > { %p155_p1 = scmp.eq.s32.totalorder %s154_s29, 0  ;;  %p168_p2 = scmp.eq.s32.totalorder %s1040_s25, 1 }
   0x7   : > { %p173_p3 = scmp.ne.s32.totalorder %s964_s22, %s960_s21  ;;  %p174_p4 = scmp.eq.s32.totalorder %s793_s26, 1 }
   0x8   : > { %s1055_s30 = scalar_select %p155_p1, %s968_s23, %s157_s28  }
   0x9   : > { %p1057_p5 = por %p168_p2, %p167_p0  ;;  %p1061_p6 = por %p174_p4, %p173_p3 }
   0xa   : > { %p796_p7 = scmp.ge.s32.totalorder %s972_s24, 1  ;;  %p215_p8 = scmp.lt.s32.totalorder %s972_s24, 3 }
   0xc   : > { %p216_p9 = pnand %p796_p7, %p215_p8 }
   0xd   : > { %p245_p10 = scmp.lt.s32.totalorder (!%p216_p9), %s1040_s25, 1  ;;  %s974_s16 = smov (!%p216_p9), 127  }
   0xe   : > { %219 = sbr.rel (%p216_p9) target bundleno = 600 (0x258), region = 44  ;;  %s975_s17 = smov (!%p216_p9), 111  }
   0xf   : > { %s976_s18 = smov (!%p216_p9), 112   ;;  %s977_s19 = smov (!%p216_p9), 113  }
  0x10   : > { %s978_s20 = smov (!%p216_p9), 16   ;;  %s979_s26 = smov (!%p216_p9), 1  }
  0x11   : > { %s980_s28 = smov (!%p216_p9), 17   ;;  %s981_s29 = smov (!%p216_p9), 15  }
  0x12   : > { %s983_s13 = smov (!%p216_p9), [#allocation3]  }
  0x13   : > { %v300_v0 = vlaneseq  ;;  %v252_v1 = vld [vmem:[%s1269_s4] sm:$0xff]  ;;  %s246_s11 = scalar_select %p245_p10, %s1040_s25, 1  ;;  %v982_v34 = vmov 0   ;;  %v896_v37 = vld [vmem:[%s1270_s5 + $0x78] sm:$0xff]   ;;  %v898_v39 = vld [vmem:[%s1270_s5 + $0x70] sm:$0xff]   ;;  %vm512_vm6 = vcmask 1041408  }
  0x14   : > { %v1073_v3 = vunpack.c.l.bf16 %v252_v1  ;;  %v1075_v4 = vunpack.c.h.bf16 %v252_v1  ;;  %551 = vmatprep.mubr.bf16.mxu0 %v982_v34  ;;  %893 = vset.pattern.permute.xlu0 %v982_v34  ;;  %v259_v35 = vld [vmem:[%s1267_s2] sm:$0xff]  ;;  %v897_v38 = vld [vmem:[%s1270_s5 + $0x38] sm:$0xff]   ;;  %v899_v40 = vld [vmem:[%s1270_s5 + $0x30] sm:$0xff]   ;;  %vm508_vm9 = vcmask 293888   ;;  %vm718_vm12 = vcmask 523264   ;;  %s916_s14 = sshll.u32 %s983_s13, 4  ;;  %s917_s14 = int_to_ptr.vmem [resolvable:$false] %s916_s14 }
  0x15   : > { %v306_v2 = vshrl.u32 %v300_v0, 7  ;;  %s822_s12 = sshll.u32 %s246_s11, 3  ;;  %894 = vset.pattern.permute.xlu1 %v982_v34  ;;  %v260_v36 = vld [vmem:[%s1268_s3] sm:$0xff]  ;;  %823 = vmatprep.subr.bf16.mxu1 %v896_v37  ;;  %v900_v41 = vld [vmem:[%s1270_s5 + $0x68] sm:$0xff]   ;;  %v904_v45 = vld [vmem:[%s1270_s5 + $0x58] sm:$0xff]   ;;  %v1161_v47 = vand.u32 127, %v300_v0 }
  0x16   : > { %s249_s15 = scalar_lea.vmem %s1265_s0, %s822_s12  ;;  %824 = vmatpush3.bf16.msra.mxu1 %v897_v38  ;;  %v901_v42 = vld [vmem:[%s1270_s5 + $0x28] sm:$0xff]   ;;  %v902_v43 = vld [vmem:[%s1270_s5 + $0x60] sm:$0xff]   ;;  %v905_v46 = vld [vmem:[%s1270_s5 + $0x18] sm:$0xff]  }
  0x17   : > { %v413_v5 = vsub.s32 5, %v306_v2  ;;  %v457_v6 = vsub.s32 7, %v306_v2  ;;  %v438_v7 = vsub.s32 6, %v306_v2  ;;  %v251_v8 = vld [vmem:[%s249_s15] sm:$0xff]  ;;  %v326_v14 = vsub.s32 1, %v306_v2  ;;  %825 = vmatprep.subr.bf16.mxu1 %v898_v39  ;;  %s918_s15 = scalar_lea.vmem %s917_s14, 256 }
  0x18   : > { %404 = vrot.lane.b32.xlu1 %v251_v8, %s974_s16  ;;  %473 = vrot.lane.b32.xlu0 %v251_v8, %s975_s17  ;;  %v294_v13 = vcombine.high %v251_v8, %v251_v8  ;;  %v388_v17 = vsub.s32 4, %v306_v2  ;;  %v370_v22 = vsub.s32 3, %v306_v2  ;;  %v1112_v27 = vsub.s32 0, %v306_v2  ;;  %v903_v44 = vld [vmem:[%s1270_s5 + $0x20] sm:$0xff]   ;;  %v253_v48 = vld [vmem:[%s1269_s4 + $0x8] sm:$0x11] }
  0x19   : > { %v1081_v9 = vrot.slane %v1073_v3, %v413_v5  ;;  %v1084_v10 = vrot.slane %v1075_v4, %v413_v5  ;;  %v1087_v11 = vrot.slane %v1073_v3, %v457_v6  ;;  %v1090_v12 = vrot.slane %v1075_v4, %v457_v6 }
  0x1a   : > { %v1093_v15 = vrot.slane %v1073_v3, %v438_v7  ;;  %v1096_v16 = vrot.slane %v1075_v4, %v438_v7  ;;  %v1099_v18 = vrot.slane %v1073_v3, %v326_v14  ;;  %v1102_v19 = vrot.slane %v1075_v4, %v326_v14  ;;  %826 = vmatpush3.bf16.msra.mxu1 %v899_v40 }
  0x1b   : > { %v389_v20 = vrot.slane %v1073_v3, %v388_v17  ;;  %v393_v21 = vrot.slane %v1075_v4, %v388_v17  ;;  %v1107_v24 = vrot.slane %v1073_v3, %v370_v22  ;;  %v1110_v25 = vrot.slane %v1075_v4, %v370_v22  ;;  %827 = vmatprep.subr.bf16.mxu1 %v900_v41 }
  0x1c   : > { %448 = vrot.lane.b32.xlu0 %v251_v8, %s976_s18  ;;  %406 = vrot.lane.b32.xlu1 %v294_v13, %s974_s16  ;;  %v308_v29 = vrot.slane %v1073_v3, %v1112_v27  ;;  %v312_v30 = vrot.slane %v1075_v4, %v1112_v27  ;;  %v351_v31 = vsub.s32 2, %v306_v2  ;;  %vm408_vm0 = vcmp.lt.s32.totalorder %v1161_v47, 127 }
  0x1d   : > { %v396_v23 = vcombine.low %v389_v20, %v393_v21  ;;  %v256_v51 = vunpack.c.l.bf16 %v253_v48  ;;  %v257_v52 = vunpack.c.h.bf16 %v253_v48  ;;  %vm452_vm1 = vcmp.lt.s32.totalorder %v1161_v47, 112 }
  0x1e   : > { %v1119_v32 = vrot.slane %v1073_v3, %v351_v31  ;;  %v1122_v33 = vrot.slane %v1075_v4, %v351_v31  ;;  %828 = vmatpush3.bf16.msra.mxu1 %v901_v42  ;;  %vm477_vm2 = vcmp.lt.s32.totalorder %v1161_v47, 111  ;;  %vm433_vm3 = vcmp.lt.s32.totalorder %v1161_v47, 113 }
  0x1f   : > { %v398_v26 = vmul.f32 %v396_v23, %v251_v8  ;;  %829 = vmatprep.subr.bf16.mxu1 %v902_v43  ;;  %v483_v59 = vrot.slane %v256_v51, %v1112_v27  ;;  %v487_v60 = vrot.slane %v257_v52, %v1112_v27  ;;  %vm321_vm4 = vcmp.lt.s32.totalorder %v1161_v47, 16 }
  0x20   : > { %450 = vrot.lane.b32.xlu1 %v294_v13, %s976_s18  ;;  %475 = vrot.lane.b32.xlu0 %v294_v13, %s975_s17  ;;  %vm365_vm5 = vcmp.lt.s32.totalorder %v1161_v47, 1  ;;  %vm302_vm7 = vcmp.lt.s32.totalorder %v1161_v47, 17  ;;  %vm346_vm8 = vcmp.lt.s32.totalorder %v1161_v47, 15  ;;  %v258_v47 = vld [vmem:[%s1266_s1] sm:$0xf] }
  0x21   : > { %v400_v28 = vcombine.high %v398_v26, %v398_v26  ;;  %402 = vst [vmem:[#allocation2 + $0x48] sm:$0xf] %v398_v26 }
  0x22   : > { %830 = vmatpush3.bf16.msra.mxu1 %v903_v44 }
  0x23   : > { %403 = vst [vmem:[#allocation2 + $0x28] sm:$0xf] %v400_v28  ;;  %831 = vmatprep.subr.bf16.mxu1 %v904_v45 }
  0x24   : > { %431 = vrot.lane.b32.xlu1 %v294_v13, %s977_s19  ;;  %429 = vrot.lane.b32.xlu0 %v251_v8, %s977_s19  ;;  %s242_s19 = sand.u32 1, %s964_s22  }
  0x25   : > { %s721_s12 = scalar_lea.sflag [#allocation4], %s242_s19 }
  0x26   : > { %832 = vmatpush3.bf16.msra.mxu1 %v905_v46 }
  0x28   : > { %319 = vrot.lane.b32.xlu1 %v294_v13, %s978_s20  ;;  %317 = vrot.lane.b32.xlu0 %v251_v8, %s978_s20  ;;  %s797_s20 = sshll.u32 %s242_s19, 3 }
  0x2c   : > { %363 = vrot.lane.b32.xlu1 %v294_v13, %s979_s26  ;;  %361 = vrot.lane.b32.xlu0 %v251_v8, %s979_s26  ;;  %s819_s26 = sshll.u32 %s1040_s25, 7 }
  0x2d   : > { %s1224_s11 = scalar_lea.hbm %s1271_s6, %s819_s26 }
  0x30   : > { %298 = vrot.lane.b32.xlu1 %v294_v13, %s980_s28  ;;  %296 = vrot.lane.b32.xlu0 %v251_v8, %s980_s28  ;;  %s244_s28 = scalar_lea.vmem [#allocation3], %s797_s20 }
  0x34   : > { %344 = vrot.lane.b32.xlu1 %v294_v13, %s981_s29  ;;  %342 = vrot.lane.b32.xlu0 %v251_v8, %s981_s29  ;;  %s734_s29 = sshll.u32 %s244_s28, 4  ;;  %s1226_s29 = int_to_ptr.vmem [resolvable:$true] %s734_s29 }
  0x35   : > { %s912_s25 = scalar_lea.vmem %s1226_s29, 128  ;;  %p919_p0 = scmp.lt.s32.totalorder %s1226_s29, %s917_s14 }
  0x36   : > { %p913_p11 = scmp.ne.s32.totalorder %s1226_s29, %s912_s25  ;;  %p920_p1 = scmp.lt.s32.totalorder %s918_s15, %s912_s25 }
  0x38   : > { %562 = vperm.xlu0 %893, %v259_v35   ;;  %569 = vperm.xlu1 %894, %v260_v36   ;;  %p914_p12 = pnand %p913_p11, %p1057_p5  ;;  %p921_p2 = por %p920_p1, %p919_p0 }
  0x3a   : > { %p915_p13 = pneg %p914_p12 }
  0x3c   : > { %p922_p3 = pnand %p921_p2, %p915_p13 }
  0x8a   : > { %v405_v49 = vpop.permute.xlu1 %404  ;;  %v474_v50 = vpop.permute.xlu0 %473 }
  0x8e   : > { %v449_v53 = vpop.permute.xlu0 %448  ;;  %v407_v54 = vpop.permute.xlu1 %406 }
  0x8f   : > { %v409_v55 = vsel %vm408_vm0, %v405_v49, %v407_v54  ;;  %v410_v56 = vsel %vm408_vm0, %v407_v54, %v405_v49 }
  0x90   : > { %v419_v57 = vmul.f32 %v1081_v9, %v409_v55  ;;  %v420_v58 = vmul.f32 %v1084_v10, %v410_v56 }
  0x92   : > { %v423_v61 = vrot.slane %v419_v57, 4  ;;  %v424_v62 = vrot.slane %v420_v58, 4  ;;  %v451_v63 = vpop.permute.xlu1 %450  ;;  %v476_v0 = vpop.permute.xlu0 %475 }
  0x93   : > { %v453_v1 = vsel %vm452_vm1, %v449_v53, %v451_v63  ;;  %v454_v2 = vsel %vm452_vm1, %v451_v63, %v449_v53  ;;  %v478_v5 = vsel %vm477_vm2, %v474_v50, %v476_v0  ;;  %v479_v6 = vsel %vm477_vm2, %v476_v0, %v474_v50 }
  0x94   : > { %427 = vst [vmem:[#allocation2 + $0x48] sm:$0xf0] %v423_v61  ;;  %428 = vst [vmem:[#allocation2 + $0x28] sm:$0xf0] %v424_v62  ;;  %v463_v7 = vmul.f32 %v1087_v11, %v453_v1  ;;  %v464_v8 = vmul.f32 %v1090_v12, %v454_v2  ;;  %v488_v9 = vmul.f32 %v483_v59, %v478_v5  ;;  %v908_v1 = vld [vmem:[%s1270_s5 + $0x48] sm:$0xff]   ;;  %v910_v5 = vld [vmem:[%s1270_s5 + $0x40] sm:$0xff]  }
  0x95   : > { %v489_v10 = vmul.f32 %v487_v60, %v479_v6  ;;  %v909_v2 = vld [vmem:[%s1270_s5 + $0x8] sm:$0xff]   ;;  %v911_v6 = vld [vmem:[%s1270_s5] sm:$0xff]  }
  0x96   : > { %v467_v13 = vrot.slane %v463_v7, 4  ;;  %v468_v14 = vrot.slane %v464_v8, 4  ;;  %490 = vst [vmem:[#allocation2 + $0x40] sm:$0xf] %v488_v9  ;;  %v432_v17 = vpop.permute.xlu1 %431  ;;  %v430_v20 = vpop.permute.xlu0 %429 }
  0x97   : > { %491 = vst [vmem:[#allocation2 + $0x38] sm:$0xf] %v489_v10  ;;  %v434_v21 = vsel %vm433_vm3, %v430_v20, %v432_v17  ;;  %v435_v22 = vsel %vm433_vm3, %v432_v17, %v430_v20 }
  0x98   : > { %471 = vst [vmem:[#allocation2 + $0x8] sm:$0xf0] %v467_v13  ;;  %472 = vst [vmem:[#allocation2 + $0x20] sm:$0xf0] %v468_v14  ;;  %v444_v11 = vmul.f32 %v1093_v15, %v434_v21  ;;  %v445_v12 = vmul.f32 %v1096_v16, %v435_v22 }
  0x9a   : > { %446 = vst [vmem:[#allocation2 + $0x8] sm:$0xf] %v444_v11  ;;  %447 = vst [vmem:[#allocation2 + $0x20] sm:$0xf] %v445_v12  ;;  %v320_v23 = vpop.permute.xlu1 %319  ;;  %v318_v26 = vpop.permute.xlu0 %317 }
  0x9b   : > { %v322_v28 = vsel %vm321_vm4, %v318_v26, %v320_v23  ;;  %v323_v31 = vsel %vm321_vm4, %v320_v23, %v318_v26  ;;  %v497_v45 = vld [vmem:[#allocation2 + $0x28] sm:$0xff] }
  0x9c   : > { %v332_v34 = vmul.f32 %v1099_v18, %v323_v31  ;;  %v333_v35 = vmul.f32 %v1102_v19, %v322_v28  ;;  %v496_v48 = vld [vmem:[#allocation2 + $0x48] sm:$0xff] }
  0x9d   : > { %v500_v37 = vld [vmem:[#allocation2 + $0x40] sm:$0xf] }
  0x9e   : > { %v501_v36 = vld [vmem:[#allocation2 + $0x38] sm:$0xf]  ;;  %v336_v15 = vrot.slane %v332_v34, 4  ;;  %v337_v38 = vrot.slane %v333_v35, 4  ;;  %v364_v16 = vpop.permute.xlu1 %363  ;;  %v362_v39 = vpop.permute.xlu0 %361  ;;  %v506_v41 = vpack.c.bf16 %v500_v37, %v500_v37 }
  0x9f   : > { %v507_v40 = vpack.c.bf16 %v501_v36, %v501_v36  ;;  %v366_v42 = vsel %vm365_vm5, %v362_v39, %v364_v16  ;;  %v367_v43 = vsel %vm365_vm5, %v364_v16, %v362_v39 }
  0xa0   : > { %340 = vst [vmem:[#allocation2 + $0x30] sm:$0xf0] %v336_v15  ;;  %341 = vst [vmem:[#allocation2] sm:$0xf0] %v337_v38  ;;  %v376_v44 = vmul.f32 %v1107_v24, %v367_v43  ;;  %v377_v18 = vmul.f32 %v1110_v25, %v366_v42  ;;  %v514_v19 = vsel %vm512_vm6, %v506_v41, 0 }
  0xa1   : > { %800 = vmatprep.subr.msk.bf16.mxu0 %vm512_vm6, %v507_v40  ;;  %v499_v46 = vld [vmem:[#allocation2 + $0x20] sm:$0xff]  ;;  %v498_v49 = vld [vmem:[#allocation2 + $0x8] sm:$0xff] }
  0xa2   : > { %530 = vmatpush1.bf16.msra.mxu0 %v514_v19  ;;  %v380_v50 = vrot.slane %v376_v44, 4  ;;  %v381_v51 = vrot.slane %v377_v18, 4  ;;  %v299_v52 = vpop.permute.xlu1 %298  ;;  %v297_v53 = vpop.permute.xlu0 %296  ;;  %v505_v54 = vpack.c.bf16 %v499_v46, %v497_v45  ;;  %v504_v55 = vpack.c.bf16 %v498_v49, %v496_v48 }
  0xa3   : > { %v303_v56 = vsel %vm302_vm7, %v297_v53, %v299_v52  ;;  %v304_v57 = vsel %vm302_vm7, %v299_v52, %v297_v53 }
  0xa4   : > { %384 = vst [vmem:[#allocation2 + $0x18] sm:$0xf0] %v380_v50  ;;  %385 = vst [vmem:[#allocation2 + $0x10] sm:$0xf0] %v381_v51  ;;  %v313_v24 = vmul.f32 %v308_v29, %v304_v57  ;;  %v314_v25 = vmul.f32 %v312_v30, %v303_v56  ;;  %531 = vmatprep.subr.bf16.mxu0 %v505_v54 }
  0xa6   : > { %532 = vmatpush1.bf16.msra.mxu0 %v504_v55  ;;  %315 = vst [vmem:[#allocation2 + $0x30] sm:$0xf] %v313_v24  ;;  %316 = vst [vmem:[#allocation2] sm:$0xf] %v314_v25  ;;  %v345_v58 = vpop.permute.xlu1 %344  ;;  %v343_v59 = vpop.permute.xlu0 %342 }
  0xa7   : > { %v347_v60 = vsel %vm346_vm8, %v343_v59, %v345_v58  ;;  %v348_v61 = vsel %vm346_vm8, %v345_v58, %v343_v59 }
  0xa8   : > { %v357_v62 = vmul.f32 %v1119_v32, %v348_v61  ;;  %v358_v63 = vmul.f32 %v1122_v33, %v347_v60  ;;  %v906_v32 = vld [vmem:[%s1270_s5 + $0x50] sm:$0xff]  }
  0xa9   : > { %v907_v33 = vld [vmem:[%s1270_s5 + $0x10] sm:$0xff]   ;;  %833 = vmatprep.subr.bf16.mxu1 %v906_v32 }
  0xaa   : > { %359 = vst [vmem:[#allocation2 + $0x18] sm:$0xf] %v357_v62  ;;  %360 = vst [vmem:[#allocation2 + $0x10] sm:$0xf] %v358_v63  ;;  %834 = vmatpush3.bf16.msra.mxu1 %v907_v33 }
  0xab   : > { %835 = vmatprep.subr.bf16.mxu1 %v908_v1 }
  0xad   : > { %v493_v3 = vld [vmem:[#allocation2] sm:$0xff]  ;;  %v492_v4 = vld [vmem:[#allocation2 + $0x30] sm:$0xff] }
  0xae   : > { %836 = vmatpush3.bf16.msra.mxu1 %v909_v2 }
  0xaf   : > { %837 = vmatprep.subr.bf16.mxu1 %v910_v5 }
  0xb1   : > { %v495_v29 = vld [vmem:[#allocation2 + $0x10] sm:$0xff]  ;;  %v494_v27 = vld [vmem:[#allocation2 + $0x18] sm:$0xff] }
  0xb2   : > { %v503_v30 = vpack.c.bf16 %v495_v29, %v493_v3  ;;  %v502_v0 = vpack.c.bf16 %v494_v27, %v492_v4  ;;  %838 = vmatpush3.bf16.msra.mxu1 %v911_v6 }
  0xb3   : > { %v563_v7 = vpop.permute.xlu0 %562  ;;  %v570_v9 = vpop.permute.xlu1 %569 }
  0xb4   : > { %533 = vmatprep.subr.bf16.mxu0 %v503_v30 }
  0xb5   : > { %534 = vmatpush1.bf16.msra.mxu0 %v502_v0 }
  0xb8   : > { %801 = vmatmul.mubr.msk.bf16.vlgmr.msra.gmra.mxu0 %vm508_vm9, %v258_v47 }
 0x178   : > { %v553_v8 = vpop.f32.mrf.mxu0 }
 0x179   : > { %v565_v10 = vmul.f32 %v563_v7, %v553_v8 }
 0x17a   : > { %v555_v13 = vpop.f32.mrf.mxu0 }
 0x17b   : > { %v572_v14 = vadd.f32 %v570_v9, %v565_v10  ;;  %v566_v17 = vmul.f32 %v563_v7, %v555_v13 }
 0x17c   : > { %v557_v20 = vpop.f32.mrf.mxu0 }
 0x17d   : > { %vm574_vm10 = vcmp.ge.f32.partialorder %v572_v14, 0.0  ;;  %v576_v21 = vmul.f32 0.2, %v572_v14  ;;  %v573_v22 = vadd.f32 %v570_v9, %v566_v17 }
 0x17e   : > { %v558_v11 = vpop.f32.mrf.mxu0 }
 0x17f   : > { %vm575_vm11 = vcmp.ge.f32.partialorder %v573_v22, 0.0  ;;  %v577_v12 = vmul.f32 0.2, %v573_v22  ;;  %v578_v23 = vsel %vm574_vm10, %v572_v14, %v576_v21 }
 0x180   : > { %v580_v31 = vpack.c.bf16 %v578_v23, %v578_v23 }
 0x181   : > { %v579_v26 = vsel %vm575_vm11, %v573_v22, %v577_v12 }
 0x182   : > { %v581_v28 = vpack.c.bf16 %v579_v26, %v579_v26 }
 0x184   : > { %710 = vmatprep.mubr.bf16.mxu1 %v581_v28 }
 0x185   : > { %711 = vmatmul.mubr.bf16.vlgmr.msra.gmra.mxu1 %v580_v31 }
 0x245   : > { %v839_v34 = vpop.f32.mrf.mxu1 }
 0x247   : > { %v840_v35 = vpop.f32.mrf.mxu1 }
 0x248   : > { %v841_v36 = vadd.f32 %v840_v35, %v839_v34 }
 0x249   : > { %v842_v37 = vpop.f32.mrf.mxu1 }
 0x24a   : > { %719 = vst.msk [vmem:[%s244_s28] sm:$0xff] %vm718_vm12, %v841_v36 }
 0x24b   : > { %v843_v15 = vpop.f32.mrf.mxu1 }
 0x24c   : > { %925 = shalt.err (!%p922_p3)
}
 0x24d   : > { %s926_s16 = scalar_lea.hbm %s1224_s11, 128  ;;  %s930_s19 = scalar_lea.hbm %s1271_s6, 256 }
 0x24e   : > { %p927_p4 = scmp.ne.s32.totalorder %s1224_s11, %s926_s16  ;;  %p931_p9 = scmp.lt.s32.totalorder %s1224_s11, %s1271_s6 }
 0x24f   : > { %p932_p10 = scmp.lt.s32.totalorder %s930_s19, %s926_s16 }
 0x250   : > { %p928_p7 = pnand %p927_p4, %p1057_p5 }
 0x251   : > { %p933_p11 = por %p932_p10, %p931_p9 }
 0x252   : > { %p929_p8 = pneg %p928_p7 }
 0x254   : > { %p934_p12 = pnand %p933_p11, %p929_p8 }
 0x256   : > { %937 = shalt.err (!%p934_p12)
}
 0x257   : > { %845 = dma.vmem_to_hbm [thread:$0]  (%p1057_p5), %s1226_s29, 128, %s1224_s11, %s721_s12  }
 0x258 PF: > { %p851_p13 = scmp.ge.s32.totalorder %s972_s24, 2  ;;  %s746_s28 = sand.u32 1, %s960_s21  }
 0x259   : > { %s747_s9 = scalar_lea.sflag [#allocation4], %s746_s28 }
 0x25a   : > { %p848_p0 = pnand %p851_p13, %p1061_p6 }
 0x25c   : > { %p849_p1 = pneg %p848_p0 }
 0x25e   : > { %955 = dma.done.wait (%p849_p1), %s747_s9, 128  }
 0x25f   : > { %957 = vsyncadd (%p849_p1), %s747_s9, 4294967168  ;;  %p16_p2 = scmp.ge.s32.totalorder %s1044_s27, 4   ;;  %s1274_s21 = smov %s964_s22 }
 0x260   : > { %s1275_s22 = smov %s968_s23  ;;  %s1276_s23 = smov %s1055_s30 }
 0x261   : > { %s1277_s24 = smov %s1044_s27  ;;  %18 = sbr.rel (!%p16_p2) target bundleno = 3 (0x3), region = 79 }
 0x266   :  { %752 = vsyncpa [#allocation4], 1 }
 0x267   :  { %754 = vsyncpa [#allocation4 + $0x1], 1 }

// kernel: tpu_custom_call.1
= control target key start
LH: loop header
LB: loop body
LE: loop exit
PB: predicated region body
PF: predicated region fallthrough
CT: control target
= control target key end

     0   :  { %11 = vsyncpa [#allocation4], 0  ;;  %s1265_s0 = inlined_call_operand.vmem [shape: f32[2,4,256], index: 0, kind: input, shape index: {}]   ;;  %s1266_s1 = inlined_call_operand.vmem [shape: bf16[8,36], index: 1, kind: input, shape index: {}]   ;;  %s1267_s2 = inlined_call_operand.vmem [shape: f32[8,1], index: 2, kind: input, shape index: {}]   ;;  %s1268_s3 = inlined_call_operand.vmem [shape: f32[8,1], index: 3, kind: input, shape index: {}]   ;;  %s1269_s4 = inlined_call_operand.vmem [shape: bf16[9,256], index: 4, kind: input, shape index: {}]   ;;  %s1270_s5 = inlined_call_operand.vmem [shape: bf16[256,64], index: 5, kind: input, shape index: {}]   ;;  %s1271_s6 = inlined_call_operand.hbm [shape: f32[2,8,64], index: 6, kind: output, shape index: {}]  }
   0x1   :  { %13 = vsyncpa [#allocation4 + $0x1], 0  ;;  %s1019_s21 = smov 0   ;;  %s1021_s22 = smov 0  }
   0x2   :  { %s1023_s23 = smov 0   ;;  %s1025_s24 = smov 0  }
   0x3 LB: > { %s1040_s25 = sadd.s32 4294967295, %s972_s24   ;;  %s793_s26 = sadd.s32 4294967294, %s972_s24   ;;  %s972_s24 = sphi %s1025_s24, %s1277_s24   ;;  %s968_s23 = sphi %s1023_s23, %s1276_s23   ;;  %s964_s22 = sphi %s1021_s22, %s1275_s22   ;;  %s960_s21 = sphi %s1019_s21, %s1274_s21  }
   0x4   : > { %s1044_s27 = sadd.s32 1, %s972_s24   ;;  %s157_s28 = sadd.s32 1, %s968_s23 }
   0x5   : > { %s154_s29 = ssub.s32 %s972_s24, %s1044_s27  ;;  %p167_p0 = scmp.ne.s32.totalorder %s968_s23, %s964_s22 }
   0x6   : > { %p155_p1 = scmp.eq.s32.totalorder %s154_s29, 0  ;;  %p168_p2 = scmp.eq.s32.totalorder %s1040_s25, 1 }
   0x7   : > { %p173_p3 = scmp.ne.s32.totalorder %s964_s22, %s960_s21  ;;  %p174_p4 = scmp.eq.s32.totalorder %s793_s26, 1 }
   0x8   : > { %s1055_s30 = scalar_select %p155_p1, %s968_s23, %s157_s28  }
   0x9   : > { %p1057_p5 = por %p168_p2, %p167_p0  ;;  %p1061_p6 = por %p174_p4, %p173_p3 }
   0xa   : > { %p796_p7 = scmp.ge.s32.totalorder %s972_s24, 1  ;;  %p215_p8 = scmp.lt.s32.totalorder %s972_s24, 3 }
   0xc   : > { %p216_p9 = pnand %p796_p7, %p215_p8 }
   0xd   : > { %p245_p10 = scmp.lt.s32.totalorder (!%p216_p9), %s1040_s25, 1  ;;  %s974_s16 = smov (!%p216_p9), 127  }
   0xe   : > { %219 = sbr.rel (%p216_p9) target bundleno = 600 (0x258), region = 44  ;;  %s975_s17 = smov (!%p216_p9), 111  }
   0xf   : > { %s976_s18 = smov (!%p216_p9), 112   ;;  %s977_s19 = smov (!%p216_p9), 113  }
  0x10   : > { %s978_s20 = smov (!%p216_p9), 16   ;;  %s979_s26 = smov (!%p216_p9), 1  }
  0x11   : > { %s980_s28 = smov (!%p216_p9), 17   ;;  %s981_s29 = smov (!%p216_p9), 15  }
  0x12   : > { %s983_s13 = smov (!%p216_p9), [#allocation3]  }
  0x13   : > { %v300_v0 = vlaneseq  ;;  %v252_v1 = vld [vmem:[%s1269_s4] sm:$0xff]  ;;  %s246_s11 = scalar_select %p245_p10, %s1040_s25, 1  ;;  %v982_v34 = vmov 0   ;;  %v896_v37 = vld [vmem:[%s1270_s5 + $0x78] sm:$0xff]   ;;  %v898_v39 = vld [vmem:[%s1270_s5 + $0x70] sm:$0xff]   ;;  %vm512_vm6 = vcmask 1041408  }
  0x14   : > { %v1073_v3 = vunpack.c.l.bf16 %v252_v1  ;;  %v1075_v4 = vunpack.c.h.bf16 %v252_v1  ;;  %551 = vmatprep.mubr.bf16.mxu0 %v982_v34  ;;  %893 = vset.pattern.permute.xlu0 %v982_v34  ;;  %v259_v35 = vld [vmem:[%s1267_s2] sm:$0xff]  ;;  %v897_v38 = vld [vmem:[%s1270_s5 + $0x38] sm:$0xff]   ;;  %v899_v40 = vld [vmem:[%s1270_s5 + $0x30] sm:$0xff]   ;;  %vm508_vm9 = vcmask 293888   ;;  %vm718_vm12 = vcmask 523264   ;;  %s916_s14 = sshll.u32 %s983_s13, 4  ;;  %s917_s14 = int_to_ptr.vmem [resolvable:$false] %s916_s14 }
  0x15   : > { %v306_v2 = vshrl.u32 %v300_v0, 7  ;;  %s822_s12 = sshll.u32 %s246_s11, 3  ;;  %894 = vset.pattern.permute.xlu1 %v982_v34  ;;  %v260_v36 = vld [vmem:[%s1268_s3] sm:$0xff]  ;;  %823 = vmatprep.subr.bf16.mxu1 %v896_v37  ;;  %v900_v41 = vld [vmem:[%s1270_s5 + $0x68] sm:$0xff]   ;;  %v904_v45 = vld [vmem:[%s1270_s5 + $0x58] sm:$0xff]   ;;  %v1161_v47 = vand.u32 127, %v300_v0 }
  0x16   : > { %s249_s15 = scalar_lea.vmem %s1265_s0, %s822_s12  ;;  %824 = vmatpush3.bf16.msra.mxu1 %v897_v38  ;;  %v901_v42 = vld [vmem:[%s1270_s5 + $0x28] sm:$0xff]   ;;  %v902_v43 = vld [vmem:[%s1270_s5 + $0x60] sm:$0xff]   ;;  %v905_v46 = vld [vmem:[%s1270_s5 + $0x18] sm:$0xff]  }
  0x17   : > { %v413_v5 = vsub.s32 5, %v306_v2  ;;  %v457_v6 = vsub.s32 7, %v306_v2  ;;  %v438_v7 = vsub.s32 6, %v306_v2  ;;  %v251_v8 = vld [vmem:[%s249_s15] sm:$0xff]  ;;  %v326_v14 = vsub.s32 1, %v306_v2  ;;  %825 = vmatprep.subr.bf16.mxu1 %v898_v39  ;;  %s918_s15 = scalar_lea.vmem %s917_s14, 256 }
  0x18   : > { %404 = vrot.lane.b32.xlu1 %v251_v8, %s974_s16  ;;  %473 = vrot.lane.b32.xlu0 %v251_v8, %s975_s17  ;;  %v294_v13 = vcombine.high %v251_v8, %v251_v8  ;;  %v388_v17 = vsub.s32 4, %v306_v2  ;;  %v370_v22 = vsub.s32 3, %v306_v2  ;;  %v1112_v27 = vsub.s32 0, %v306_v2  ;;  %v903_v44 = vld [vmem:[%s1270_s5 + $0x20] sm:$0xff]   ;;  %v253_v48 = vld [vmem:[%s1269_s4 + $0x8] sm:$0x11] }
  0x19   : > { %v1081_v9 = vrot.slane %v1073_v3, %v413_v5  ;;  %v1084_v10 = vrot.slane %v1075_v4, %v413_v5  ;;  %v1087_v11 = vrot.slane %v1073_v3, %v457_v6  ;;  %v1090_v12 = vrot.slane %v1075_v4, %v457_v6 }
  0x1a   : > { %v1093_v15 = vrot.slane %v1073_v3, %v438_v7  ;;  %v1096_v16 = vrot.slane %v1075_v4, %v438_v7  ;;  %v1099_v18 = vrot.slane %v1073_v3, %v326_v14  ;;  %v1102_v19 = vrot.slane %v1075_v4, %v326_v14  ;;  %826 = vmatpush3.bf16.msra.mxu1 %v899_v40 }
  0x1b   : > { %v389_v20 = vrot.slane %v1073_v3, %v388_v17  ;;  %v393_v21 = vrot.slane %v1075_v4, %v388_v17  ;;  %v1107_v24 = vrot.slane %v1073_v3, %v370_v22  ;;  %v1110_v25 = vrot.slane %v1075_v4, %v370_v22  ;;  %827 = vmatprep.subr.bf16.mxu1 %v900_v41 }
  0x1c   : > { %448 = vrot.lane.b32.xlu0 %v251_v8, %s976_s18  ;;  %406 = vrot.lane.b32.xlu1 %v294_v13, %s974_s16  ;;  %v308_v29 = vrot.slane %v1073_v3, %v1112_v27  ;;  %v312_v30 = vrot.slane %v1075_v4, %v1112_v27  ;;  %v351_v31 = vsub.s32 2, %v306_v2  ;;  %vm408_vm0 = vcmp.lt.s32.totalorder %v1161_v47, 127 }
  0x1d   : > { %v396_v23 = vcombine.low %v389_v20, %v393_v21  ;;  %v256_v51 = vunpack.c.l.bf16 %v253_v48  ;;  %v257_v52 = vunpack.c.h.bf16 %v253_v48  ;;  %vm452_vm1 = vcmp.lt.s32.totalorder %v1161_v47, 112 }
  0x1e   : > { %v1119_v32 = vrot.slane %v1073_v3, %v351_v31  ;;  %v1122_v33 = vrot.slane %v1075_v4, %v351_v31  ;;  %828 = vmatpush3.bf16.msra.mxu1 %v901_v42  ;;  %vm477_vm2 = vcmp.lt.s32.totalorder %v1161_v47, 111  ;;  %vm433_vm3 = vcmp.lt.s32.totalorder %v1161_v47, 113 }
  0x1f   : > { %v398_v26 = vmul.f32 %v396_v23, %v251_v8  ;;  %829 = vmatprep.subr.bf16.mxu1 %v902_v43  ;;  %v483_v59 = vrot.slane %v256_v51, %v1112_v27  ;;  %v487_v60 = vrot.slane %v257_v52, %v1112_v27  ;;  %vm321_vm4 = vcmp.lt.s32.totalorder %v1161_v47, 16 }
  0x20   : > { %450 = vrot.lane.b32.xlu1 %v294_v13, %s976_s18  ;;  %475 = vrot.lane.b32.xlu0 %v294_v13, %s975_s17  ;;  %vm365_vm5 = vcmp.lt.s32.totalorder %v1161_v47, 1  ;;  %vm302_vm7 = vcmp.lt.s32.totalorder %v1161_v47, 17  ;;  %vm346_vm8 = vcmp.lt.s32.totalorder %v1161_v47, 15  ;;  %v258_v47 = vld [vmem:[%s1266_s1] sm:$0xf] }
  0x21   : > { %v400_v28 = vcombine.high %v398_v26, %v398_v26  ;;  %402 = vst [vmem:[#allocation2 + $0x48] sm:$0xf] %v398_v26 }
  0x22   : > { %830 = vmatpush3.bf16.msra.mxu1 %v903_v44 }
  0x23   : > { %403 = vst [vmem:[#allocation2 + $0x28] sm:$0xf] %v400_v28  ;;  %831 = vmatprep.subr.bf16.mxu1 %v904_v45 }
  0x24   : > { %431 = vrot.lane.b32.xlu1 %v294_v13, %s977_s19  ;;  %429 = vrot.lane.b32.xlu0 %v251_v8, %s977_s19  ;;  %s242_s19 = sand.u32 1, %s964_s22  }
  0x25   : > { %s721_s12 = scalar_lea.sflag [#allocation4], %s242_s19 }
  0x26   : > { %832 = vmatpush3.bf16.msra.mxu1 %v905_v46 }
  0x28   : > { %319 = vrot.lane.b32.xlu1 %v294_v13, %s978_s20  ;;  %317 = vrot.lane.b32.xlu0 %v251_v8, %s978_s20  ;;  %s797_s20 = sshll.u32 %s242_s19, 3 }
  0x2c   : > { %363 = vrot.lane.b32.xlu1 %v294_v13, %s979_s26  ;;  %361 = vrot.lane.b32.xlu0 %v251_v8, %s979_s26  ;;  %s819_s26 = sshll.u32 %s1040_s25, 7 }
  0x2d   : > { %s1224_s11 = scalar_lea.hbm %s1271_s6, %s819_s26 }
  0x30   : > { %298 = vrot.lane.b32.xlu1 %v294_v13, %s980_s28  ;;  %296 = vrot.lane.b32.xlu0 %v251_v8, %s980_s28  ;;  %s244_s28 = scalar_lea.vmem [#allocation3], %s797_s20 }
  0x34   : > { %344 = vrot.lane.b32.xlu1 %v294_v13, %s981_s29  ;;  %342 = vrot.lane.b32.xlu0 %v251_v8, %s981_s29  ;;  %s734_s29 = sshll.u32 %s244_s28, 4  ;;  %s1226_s29 = int_to_ptr.vmem [resolvable:$true] %s734_s29 }
  0x35   : > { %s912_s25 = scalar_lea.vmem %s1226_s29, 128  ;;  %p919_p0 = scmp.lt.s32.totalorder %s1226_s29, %s917_s14 }
  0x36   : > { %p913_p11 = scmp.ne.s32.totalorder %s1226_s29, %s912_s25  ;;  %p920_p1 = scmp.lt.s32.totalorder %s918_s15, %s912_s25 }
  0x38   : > { %562 = vperm.xlu0 %893, %v259_v35   ;;  %569 = vperm.xlu1 %894, %v260_v36   ;;  %p914_p12 = pnand %p913_p11, %p1057_p5  ;;  %p921_p2 = por %p920_p1, %p919_p0 }
  0x3a   : > { %p915_p13 = pneg %p914_p12 }
  0x3c   : > { %p922_p3 = pnand %p921_p2, %p915_p13 }
  0x8a   : > { %v405_v49 = vpop.permute.xlu1 %404  ;;  %v474_v50 = vpop.permute.xlu0 %473 }
  0x8e   : > { %v449_v53 = vpop.permute.xlu0 %448  ;;  %v407_v54 = vpop.permute.xlu1 %406 }
  0x8f   : > { %v409_v55 = vsel %vm408_vm0, %v405_v49, %v407_v54  ;;  %v410_v56 = vsel %vm408_vm0, %v407_v54, %v405_v49 }
  0x90   : > { %v419_v57 = vmul.f32 %v1081_v9, %v409_v55  ;;  %v420_v58 = vmul.f32 %v1084_v10, %v410_v56 }
  0x92   : > { %v423_v61 = vrot.slane %v419_v57, 4  ;;  %v424_v62 = vrot.slane %v420_v58, 4  ;;  %v451_v63 = vpop.permute.xlu1 %450  ;;  %v476_v0 = vpop.permute.xlu0 %475 }
  0x93   : > { %v453_v1 = vsel %vm452_vm1, %v449_v53, %v451_v63  ;;  %v454_v2 = vsel %vm452_vm1, %v451_v63, %v449_v53  ;;  %v478_v5 = vsel %vm477_vm2, %v474_v50, %v476_v0  ;;  %v479_v6 = vsel %vm477_vm2, %v476_v0, %v474_v50 }
  0x94   : > { %427 = vst [vmem:[#allocation2 + $0x48] sm:$0xf0] %v423_v61  ;;  %428 = vst [vmem:[#allocation2 + $0x28] sm:$0xf0] %v424_v62  ;;  %v463_v7 = vmul.f32 %v1087_v11, %v453_v1  ;;  %v464_v8 = vmul.f32 %v1090_v12, %v454_v2  ;;  %v488_v9 = vmul.f32 %v483_v59, %v478_v5  ;;  %v908_v1 = vld [vmem:[%s1270_s5 + $0x48] sm:$0xff]   ;;  %v910_v5 = vld [vmem:[%s1270_s5 + $0x40] sm:$0xff]  }
  0x95   : > { %v489_v10 = vmul.f32 %v487_v60, %v479_v6  ;;  %v909_v2 = vld [vmem:[%s1270_s5 + $0x8] sm:$0xff]   ;;  %v911_v6 = vld [vmem:[%s1270_s5] sm:$0xff]  }
  0x96   : > { %v467_v13 = vrot.slane %v463_v7, 4  ;;  %v468_v14 = vrot.slane %v464_v8, 4  ;;  %490 = vst [vmem:[#allocation2 + $0x40] sm:$0xf] %v488_v9  ;;  %v432_v17 = vpop.permute.xlu1 %431  ;;  %v430_v20 = vpop.permute.xlu0 %429 }
  0x97   : > { %491 = vst [vmem:[#allocation2 + $0x38] sm:$0xf] %v489_v10  ;;  %v434_v21 = vsel %vm433_vm3, %v430_v20, %v432_v17  ;;  %v435_v22 = vsel %vm433_vm3, %v432_v17, %v430_v20 }
  0x98   : > { %471 = vst [vmem:[#allocation2 + $0x8] sm:$0xf0] %v467_v13  ;;  %472 = vst [vmem:[#allocation2 + $0x20] sm:$0xf0] %v468_v14  ;;  %v444_v11 = vmul.f32 %v1093_v15, %v434_v21  ;;  %v445_v12 = vmul.f32 %v1096_v16, %v435_v22 }
  0x9a   : > { %446 = vst [vmem:[#allocation2 + $0x8] sm:$0xf] %v444_v11  ;;  %447 = vst [vmem:[#allocation2 + $0x20] sm:$0xf] %v445_v12  ;;  %v320_v23 = vpop.permute.xlu1 %319  ;;  %v318_v26 = vpop.permute.xlu0 %317 }
  0x9b   : > { %v322_v28 = vsel %vm321_vm4, %v318_v26, %v320_v23  ;;  %v323_v31 = vsel %vm321_vm4, %v320_v23, %v318_v26  ;;  %v497_v45 = vld [vmem:[#allocation2 + $0x28] sm:$0xff] }
  0x9c   : > { %v332_v34 = vmul.f32 %v1099_v18, %v323_v31  ;;  %v333_v35 = vmul.f32 %v1102_v19, %v322_v28  ;;  %v496_v48 = vld [vmem:[#allocation2 + $0x48] sm:$0xff] }
  0x9d   : > { %v500_v37 = vld [vmem:[#allocation2 + $0x40] sm:$0xf] }
  0x9e   : > { %v501_v36 = vld [vmem:[#allocation2 + $0x38] sm:$0xf]  ;;  %v336_v15 = vrot.slane %v332_v34, 4  ;;  %v337_v38 = vrot.slane %v333_v35, 4  ;;  %v364_v16 = vpop.permute.xlu1 %363  ;;  %v362_v39 = vpop.permute.xlu0 %361  ;;  %v506_v41 = vpack.c.bf16 %v500_v37, %v500_v37 }
  0x9f   : > { %v507_v40 = vpack.c.bf16 %v501_v36, %v501_v36  ;;  %v366_v42 = vsel %vm365_vm5, %v362_v39, %v364_v16  ;;  %v367_v43 = vsel %vm365_vm5, %v364_v16, %v362_v39 }
  0xa0   : > { %340 = vst [vmem:[#allocation2 + $0x30] sm:$0xf0] %v336_v15  ;;  %341 = vst [vmem:[#allocation2] sm:$0xf0] %v337_v38  ;;  %v376_v44 = vmul.f32 %v1107_v24, %v367_v43  ;;  %v377_v18 = vmul.f32 %v1110_v25, %v366_v42  ;;  %v514_v19 = vsel %vm512_vm6, %v506_v41, 0 }
  0xa1   : > { %800 = vmatprep.subr.msk.bf16.mxu0 %vm512_vm6, %v507_v40  ;;  %v499_v46 = vld [vmem:[#allocation2 + $0x20] sm:$0xff]  ;;  %v498_v49 = vld [vmem:[#allocation2 + $0x8] sm:$0xff] }
  0xa2   : > { %530 = vmatpush1.bf16.msra.mxu0 %v514_v19  ;;  %v380_v50 = vrot.slane %v376_v44, 4  ;;  %v381_v51 = vrot.slane %v377_v18, 4  ;;  %v299_v52 = vpop.permute.xlu1 %298  ;;  %v297_v53 = vpop.permute.xlu0 %296  ;;  %v505_v54 = vpack.c.bf16 %v499_v46, %v497_v45  ;;  %v504_v55 = vpack.c.bf16 %v498_v49, %v496_v48 }
  0xa3   : > { %v303_v56 = vsel %vm302_vm7, %v297_v53, %v299_v52  ;;  %v304_v57 = vsel %vm302_vm7, %v299_v52, %v297_v53 }
  0xa4   : > { %384 = vst [vmem:[#allocation2 + $0x18] sm:$0xf0] %v380_v50  ;;  %385 = vst [vmem:[#allocation2 + $0x10] sm:$0xf0] %v381_v51  ;;  %v313_v24 = vmul.f32 %v308_v29, %v304_v57  ;;  %v314_v25 = vmul.f32 %v312_v30, %v303_v56  ;;  %531 = vmatprep.subr.bf16.mxu0 %v505_v54 }
  0xa6   : > { %532 = vmatpush1.bf16.msra.mxu0 %v504_v55  ;;  %315 = vst [vmem:[#allocation2 + $0x30] sm:$0xf] %v313_v24  ;;  %316 = vst [vmem:[#allocation2] sm:$0xf] %v314_v25  ;;  %v345_v58 = vpop.permute.xlu1 %344  ;;  %v343_v59 = vpop.permute.xlu0 %342 }
  0xa7   : > { %v347_v60 = vsel %vm346_vm8, %v343_v59, %v345_v58  ;;  %v348_v61 = vsel %vm346_vm8, %v345_v58, %v343_v59 }
  0xa8   : > { %v357_v62 = vmul.f32 %v1119_v32, %v348_v61  ;;  %v358_v63 = vmul.f32 %v1122_v33, %v347_v60  ;;  %v906_v32 = vld [vmem:[%s1270_s5 + $0x50] sm:$0xff]  }
  0xa9   : > { %v907_v33 = vld [vmem:[%s1270_s5 + $0x10] sm:$0xff]   ;;  %833 = vmatprep.subr.bf16.mxu1 %v906_v32 }
  0xaa   : > { %359 = vst [vmem:[#allocation2 + $0x18] sm:$0xf] %v357_v62  ;;  %360 = vst [vmem:[#allocation2 + $0x10] sm:$0xf] %v358_v63  ;;  %834 = vmatpush3.bf16.msra.mxu1 %v907_v33 }
  0xab   : > { %835 = vmatprep.subr.bf16.mxu1 %v908_v1 }
  0xad   : > { %v493_v3 = vld [vmem:[#allocation2] sm:$0xff]  ;;  %v492_v4 = vld [vmem:[#allocation2 + $0x30] sm:$0xff] }
  0xae   : > { %836 = vmatpush3.bf16.msra.mxu1 %v909_v2 }
  0xaf   : > { %837 = vmatprep.subr.bf16.mxu1 %v910_v5 }
  0xb1   : > { %v495_v29 = vld [vmem:[#allocation2 + $0x10] sm:$0xff]  ;;  %v494_v27 = vld [vmem:[#allocation2 + $0x18] sm:$0xff] }
  0xb2   : > { %v503_v30 = vpack.c.bf16 %v495_v29, %v493_v3  ;;  %v502_v0 = vpack.c.bf16 %v494_v27, %v492_v4  ;;  %838 = vmatpush3.bf16.msra.mxu1 %v911_v6 }
  0xb3   : > { %v563_v7 = vpop.permute.xlu0 %562  ;;  %v570_v9 = vpop.permute.xlu1 %569 }
  0xb4   : > { %533 = vmatprep.subr.bf16.mxu0 %v503_v30 }
  0xb5   : > { %534 = vmatpush1.bf16.msra.mxu0 %v502_v0 }
  0xb8   : > { %801 = vmatmul.mubr.msk.bf16.vlgmr.msra.gmra.mxu0 %vm508_vm9, %v258_v47 }
 0x178   : > { %v553_v8 = vpop.f32.mrf.mxu0 }
 0x179   : > { %v565_v10 = vmul.f32 %v563_v7, %v553_v8 }
 0x17a   : > { %v555_v13 = vpop.f32.mrf.mxu0 }
 0x17b   : > { %v572_v14 = vadd.f32 %v570_v9, %v565_v10  ;;  %v566_v17 = vmul.f32 %v563_v7, %v555_v13 }
 0x17c   : > { %v557_v20 = vpop.f32.mrf.mxu0 }
 0x17d   : > { %vm574_vm10 = vcmp.ge.f32.partialorder %v572_v14, 0.0  ;;  %v576_v21 = vmul.f32 0.2, %v572_v14  ;;  %v573_v22 = vadd.f32 %v570_v9, %v566_v17 }
 0x17e   : > { %v558_v11 = vpop.f32.mrf.mxu0 }
 0x17f   : > { %vm575_vm11 = vcmp.ge.f32.partialorder %v573_v22, 0.0  ;;  %v577_v12 = vmul.f32 0.2, %v573_v22  ;;  %v578_v23 = vsel %vm574_vm10, %v572_v14, %v576_v21 }
 0x180   : > { %v580_v31 = vpack.c.bf16 %v578_v23, %v578_v23 }
 0x181   : > { %v579_v26 = vsel %vm575_vm11, %v573_v22, %v577_v12 }
 0x182   : > { %v581_v28 = vpack.c.bf16 %v579_v26, %v579_v26 }
 0x184   : > { %710 = vmatprep.mubr.bf16.mxu1 %v581_v28 }
 0x185   : > { %711 = vmatmul.mubr.bf16.vlgmr.msra.gmra.mxu1 %v580_v31 }
 0x245   : > { %v839_v34 = vpop.f32.mrf.mxu1 }
 0x247   : > { %v840_v35 = vpop.f32.mrf.mxu1 }
 0x248   : > { %v841_v36 = vadd.f32 %v840_v35, %v839_v34 }
 0x249   : > { %v842_v37 = vpop.f32.mrf.mxu1 }
 0x24a   : > { %719 = vst.msk [vmem:[%s244_s28] sm:$0xff] %vm718_vm12, %v841_v36 }
 0x24b   : > { %v843_v15 = vpop.f32.mrf.mxu1 }
 0x24c   : > { %925 = shalt.err (!%p922_p3)
}
 0x24d   : > { %s926_s16 = scalar_lea.hbm %s1224_s11, 128  ;;  %s930_s19 = scalar_lea.hbm %s1271_s6, 256 }
 0x24e   : > { %p927_p4 = scmp.ne.s32.totalorder %s1224_s11, %s926_s16  ;;  %p931_p9 = scmp.lt.s32.totalorder %s1224_s11, %s1271_s6 }
 0x24f   : > { %p932_p10 = scmp.lt.s32.totalorder %s930_s19, %s926_s16 }
 0x250   : > { %p928_p7 = pnand %p927_p4, %p1057_p5 }
 0x251   : > { %p933_p11 = por %p932_p10, %p931_p9 }
 0x252   : > { %p929_p8 = pneg %p928_p7 }
 0x254   : > { %p934_p12 = pnand %p933_p11, %p929_p8 }
 0x256   : > { %937 = shalt.err (!%p934_p12)
}
 0x257   : > { %845 = dma.vmem_to_hbm [thread:$0]  (%p1057_p5), %s1226_s29, 128, %s1224_s11, %s721_s12  }
 0x258 PF: > { %p851_p13 = scmp.ge.s32.totalorder %s972_s24, 2  ;;  %s746_s28 = sand.u32 1, %s960_s21  }
 0x259   : > { %s747_s9 = scalar_lea.sflag [#allocation4], %s746_s28 }
 0x25a   : > { %p848_p0 = pnand %p851_p13, %p1061_p6 }
 0x25c   : > { %p849_p1 = pneg %p848_p0 }
 0x25e   : > { %955 = dma.done.wait (%p849_p1), %s747_s9, 128  }
 0x25f   : > { %957 = vsyncadd (%p849_p1), %s747_s9, 4294967168  ;;  %p16_p2 = scmp.ge.s32.totalorder %s1044_s27, 4   ;;  %s1274_s21 = smov %s964_s22 }
 0x260   : > { %s1275_s22 = smov %s968_s23  ;;  %s1276_s23 = smov %s1055_s30 }
 0x261   : > { %s1277_s24 = smov %s1044_s27  ;;  %18 = sbr.rel (!%p16_p2) target bundleno = 3 (0x3), region = 79 }
 0x266   :  { %752 = vsyncpa [#allocation4], 1 }
 0x267   :  { %754 = vsyncpa [#allocation4 + $0x1], 1 }

</bundles_post_ra>
